<compile_context>
chip_gen: v7x
topology: tpu7x:2x2x1
jax: 0.10.0
libtpu: 0.0.40
codegen_flags: <defaults>
</compile_context>

<pallas_src>
import functools
import math

import jax
import jax.numpy as jnp
from jax import lax
from jax.experimental import pallas as pl
from jax.experimental.pallas import tpu as pltpu


# ---------------- single fused Pallas kernel: trunks + embedding tail + CLIP loss ----------------

def _fused_forward_kernel(patches_ref, img_ref,
                          conv_wt_ref, afc_wt_ref, bon_wt_ref, img_wt_ref, rir_wt_ref,
                          bias_ref, out_ref, *, batch, hpwp):
    f32 = jnp.float32
    bf16 = jnp.bfloat16

    def l2norm(x, eps):
        # F.normalize: x / max(||x||_2, eps); reciprocal runs on the (otherwise idle) EUP slot.
        n = jnp.sqrt(jnp.sum(x * x, axis=1, keepdims=True))
        return x * pl.reciprocal(jnp.maximum(n, eps), approx=True)

    # ----- audio trunk stand-in: conv1 (8->64, k7, s2, p3, bias=False) as an im2col matmul
    #       (output channels padded to 128 lanes; cols 64..127 are zero) -> ReLU ->
    #       per-example global average pool via reshape + mean (scales linearly with B*hpwp).
    conv = jnp.dot(patches_ref[...], conv_wt_ref[...],
                   preferred_element_type=f32)                        # (B*hpwp, 128)
    conv = jnp.maximum(conv, 0.0)
    nconv = conv.shape[-1]
    audio_feat = jnp.mean(conv.reshape(batch, hpwp, nconv), axis=1)    # (B, 128)

    # ----- image trunk stand-in: global spatial mean of the panorama -> (B, 3)
    img_feat = jnp.mean(img_ref[...], axis=2)                          # (B, 3)

    biases = bias_ref[...]             # (4, 512) f32: [audio_fc_b, bon_b_pooled, img_b, rir_b]
    afc_b = biases[0:1, :]
    bon_b = biases[1:2, :]
    img_b = biases[2:3, :]
    rir_b = biases[3:4, :]

    # ----- audio branch: fc(128->512, weight rows 64..127 are zero) + normalize(eps=1e-6)
    a = jnp.dot(audio_feat.astype(bf16), afc_wt_ref[...],
                preferred_element_type=f32) + afc_b
    a = l2norm(a, 1e-6)

    # ----- image branch: pooled-bon projection (3->512, both avg_pool1d(k=2) folded into the
    #       weights) + normalize(eps=1e-6)
    im = jnp.dot(img_feat, bon_wt_ref[...], preferred_element_type=f32) + bon_b
    im = l2norm(im, 1e-6)

    # ----- IntegModel heads + final normalizes (eps=1e-8)
    im = jnp.dot(im.astype(bf16), img_wt_ref[...], preferred_element_type=f32) + img_b
    a = jnp.dot(a.astype(bf16), rir_wt_ref[...], preferred_element_type=f32) + rir_b
    im = l2norm(im, 1e-8)
    a = l2norm(a, 1e-8)

    # ----- CLIP loss: only audio_logit = A @ I^T is materialized; image_logit == L^T, so its
    #       row-wise softmax/argmax become column-wise reductions of L.
    #       (logit_scale is exp()'d by the reference but never applied to the logits — matched.)
    b = a.shape[0]
    dn = (((1,), (1,)), ((), ()))
    L = lax.dot_general(a, im, dn, preferred_element_type=f32)         # (B, B)

    row_ids = lax.broadcasted_iota(jnp.int32, (b, b), 0)
    col_ids = lax.broadcasted_iota(jnp.int32, (b, b), 1)
    eye = (row_ids == col_ids).astype(f32)
    diag_sum = jnp.sum(L * eye)

    mr = jnp.max(L, axis=1, keepdims=True)                             # (B, 1)
    lse_r = mr + jnp.log(jnp.sum(jnp.exp(L - mr), axis=1, keepdims=True))
    mc = jnp.max(L, axis=0, keepdims=True)                             # (1, B)
    lse_c = mc + jnp.log(jnp.sum(jnp.exp(L - mc), axis=0, keepdims=True))
    # sum_i [lse(row_i) - L_ii] + sum_i [lse(col_i) - L_ii], averaged over 2B rows
    loss = (jnp.sum(lse_r) + jnp.sum(lse_c) - 2.0 * diag_sum) / (2.0 * b)

    # Audio_Accuracy = validation(audio, image): row-wise argmax of L (first occurrence on
    # exact ties, matching torch.argmax behaviour in practice).
    first_r = jnp.min(jnp.where(L == mr, col_ids, b), axis=1, keepdims=True)   # (B, 1)
    rir_acc = jnp.sum((first_r == row_ids[:, :1]).astype(f32)) / b
    # Image_Accuracy = validation(image, audio): rows of L^T == columns of L.
    first_c = jnp.min(jnp.where(L == mc, row_ids, b), axis=0, keepdims=True)   # (1, B)
    img_acc = jnp.sum((first_c == col_ids[:1, :]).astype(f32)) / b

    # Single lane-dense (1, 128) output: [loss, img_acc, rir_acc, 0, ...]
    lane = lax.broadcasted_iota(jnp.int32, (1, 128), 1)
    out_ref[...] = jnp.where(lane == 0, loss,
                             jnp.where(lane == 1, img_acc,
                                       jnp.where(lane == 2, rir_acc, 0.0)))


def fused_forward_pallas(params, patches2d, img3d, batch, hpwp):
    # TODO(synk): for realistic spectrogram sizes, tile the (B*Hp*Wp, K) slab over M with a
    # grid (M axis marked "parallel" to shard over v7x's 2 TCs) and per-example accumulators;
    # derive the tile from v7x's 32 MiB scoped / 64 MiB physical VMEM, not v5e/v6e's 128 MiB.
    return pl.pallas_call(
        functools.partial(_fused_forward_kernel, batch=batch, hpwp=hpwp),
        out_shape=jax.ShapeDtypeStruct((1, 128), jnp.float32),
        grid=(1,),
        in_specs=[
            pl.BlockSpec(patches2d.shape, lambda i: (0, 0)),
            pl.BlockSpec(img3d.shape, lambda i: (0, 0, 0)),
            pl.BlockSpec(params["conv1_wt"].shape, lambda i: (0, 0)),
            pl.BlockSpec(params["audio_fc_wt"].shape, lambda i: (0, 0)),
            pl.BlockSpec(params["bon_wt_pooled"].shape, lambda i: (0, 0)),
            pl.BlockSpec(params["img_wt"].shape, lambda i: (0, 0)),
            pl.BlockSpec(params["rir_wt"].shape, lambda i: (0, 0)),
            pl.BlockSpec(params["biases"].shape, lambda i: (0, 0)),
        ],
        out_specs=pl.BlockSpec((1, 128), lambda i: (0, 0)),
        compiler_params=pltpu.CompilerParams(dimension_semantics=("arbitrary",)),
    )(patches2d, img3d, params["conv1_wt"], params["audio_fc_wt"],
      params["bon_wt_pooled"], params["img_wt"], params["rir_wt"], params["biases"])


# ---------------- Model (deterministic synthetic params) ----------------

def init_params(key):
    ks = jax.random.split(key, 6)
    p = {}

    # AudioEmbeddingNet stand-in: conv1 (8->64, k7, s2, p3, bias=False), stored as a transposed
    # im2col matrix with the output-channel dim padded 64->128 (zero columns) so the conv
    # result, GAP feature and downstream fc are lane-dense. K=392 left unpadded (full-array
    # block, so the (8,128) divisibility rule does not apply).
    conv1_w = 0.05 * jax.random.normal(ks[0], (64, 8, 7, 7), jnp.float32)
    k = 8 * 7 * 7                                                    # 392
    p["conv1_wt"] = jnp.zeros((k, 128), jnp.float32).at[:, :64].set(conv1_w.reshape(64, k).T)

    # audio fc head 64 -> 512, pre-transposed and carried at 128 input rows (rows 64..127 zero)
    # so no slicing of the padded trunk feature is needed; stored bf16 (tail is DMA-bound).
    afc_w = 0.05 * jax.random.normal(ks[1], (512, 64), jnp.float32)
    p["audio_fc_wt"] = (jnp.zeros((128, 512), jnp.float32)
                        .at[:64, :].set(afc_w.T).astype(jnp.bfloat16))

    # ImageEmbeddingNet stand-in: bon projection 3 -> 2048 with BOTH avg_pool1d(k=2) steps
    # folded into the weights (pooling a linear output == linear with 4-column-averaged rows).
    bon_w = 0.05 * jax.random.normal(ks[2], (2048, 3), jnp.float32)
    bon_b = 0.01 * jax.random.normal(ks[3], (2048,), jnp.float32)
    p["bon_wt_pooled"] = bon_w.reshape(512, 4, 3).mean(axis=1).T     # (3, 512) f32 (tiny)
    bon_b_pooled = bon_b.reshape(512, 4).mean(axis=1)                # (512,)

    # IntegModel heads (pre-transposed, bf16 storage; MXU accumulates in f32)
    p["img_wt"] = (0.05 * jax.random.normal(ks[4], (512, 512), jnp.float32)).T.astype(jnp.bfloat16)
    p["rir_wt"] = (0.05 * jax.random.normal(ks[5], (512, 512), jnp.float32)).T.astype(jnp.bfloat16)

    # all four (512,) biases packed into ONE lane-dense operand:
    # rows = [audio_fc_b, bon_b_pooled, img_b, rir_b]  (only bon has a nonzero bias here)
    p["biases"] = jnp.zeros((4, 512), jnp.float32).at[1, :].set(bon_b_pooled)

    p["logit_scale"] = jnp.asarray(math.log(1.0 / 0.07), jnp.float32)
    return p


def integ_model_forward(params, batch_image, batch_1, batch_2):
    batch_image = batch_image[:, 0]                              # .squeeze(1) -> (B, 3, H, W)
    batch_audio = jnp.concatenate([batch_1, batch_2], axis=1)    # (B, 8, h, w)

    # TODO(synk): full ResNet18 trunk (bn/relu/maxpool/4 residual stages) not reimplemented;
    # stand-in keeps conv1 as an im2col matmul fused (with ReLU + global average pool) into
    # the single Pallas kernel below.
    B, C, H, W = batch_audio.shape
    patches = lax.conv_general_dilated_patches(
        batch_audio, filter_shape=(7, 7), window_strides=(2, 2),
        padding=((3, 3), (3, 3)),
        dimension_numbers=("NCHW", "OIHW", "NCHW"))              # (B, C*49, Hp, Wp)
    _, F, Hp, Wp = patches.shape
    # TODO(synk): build the im2col inside the kernel (strided pl.ds windows on the NCHW block)
    # to avoid this XLA-side slab write/read at realistic spectrogram sizes.
    patches2d = jnp.transpose(patches, (0, 2, 3, 1)).reshape(B * Hp * Wp, F)   # K=392, no pad

    # TODO(synk): HorizonNet('resnet50', use_rnn=True) + external checkpoint load has no clean
    # Pallas equivalent; stand-in pools the panorama to a (B, 3) feature inside the fused
    # kernel and projects it through the (pool-folded) bon weights.
    Bi, Ci, Hi, Wi = batch_image.shape
    img3d = batch_image.reshape(Bi, Ci, Hi * Wi)                 # free reshape; mean in-kernel

    _logit_scale = jnp.exp(params["logit_scale"])  # computed but unused by the loss (matches reference)

    out = fused_forward_pallas(params, patches2d, img3d, B, Hp * Wp)   # (1, 128)
    return out[0, 0], out[0, 1], out[0, 2]


if __name__ == "__main__":
    key = jax.random.PRNGKey(0)
    kp, ki, k1, k2 = jax.random.split(key, 4)
    params = init_params(kp)

    B = 2
    batch_image = jax.random.normal(ki, (B, 1, 3, 16, 32), jnp.float32)   # (B, 1, 3, H, W)
    batch_1 = jax.random.normal(k1, (B, 4, 16, 16), jnp.float32)
    batch_2 = jax.random.normal(k2, (B, 4, 16, 16), jnp.float32)

    loss, img_acc, rir_acc = jax.jit(integ_model_forward)(params, batch_image, batch_1, batch_2)
    jax.block_until_ready((loss, img_acc, rir_acc))
    print("KERNEL_OK")
</pallas_src>

<mosaic_0001>
module attributes {stable_mosaic.version = 11 : i64} {
  func.func @_fused_forward_kernel(%arg0: i32, %arg1: memref<128x392xf32, #tpu.memory_space<vmem>>, %arg2: memref<2x3x512xf32, #tpu.memory_space<vmem>>, %arg3: memref<392x128xf32, #tpu.memory_space<vmem>>, %arg4: memref<128x512xbf16, #tpu.memory_space<vmem>>, %arg5: memref<3x512xf32, #tpu.memory_space<vmem>>, %arg6: memref<512x512xbf16, #tpu.memory_space<vmem>>, %arg7: memref<512x512xbf16, #tpu.memory_space<vmem>>, %arg8: memref<4x512xf32, #tpu.memory_space<vmem>>, %arg9: memref<1x128xf32, #tpu.memory_space<vmem>>) attributes {dimension_semantics = [#tpu.dimension_semantics<arbitrary>], iteration_bounds = array<i64: 1>, scalar_prefetch = 0 : i64, scratch_operands = 0 : i64, tpu.core_type = #tpu.core_type<tc>, window_params = [{pipeline_mode = #tpu.pipeline_mode<synchronous>, transform_indices = @transform_0, window_bounds = array<i64: 128, 392>}, {pipeline_mode = #tpu.pipeline_mode<synchronous>, transform_indices = @transform_1, window_bounds = array<i64: 2, 3, 512>}, {pipeline_mode = #tpu.pipeline_mode<synchronous>, transform_indices = @transform_2, window_bounds = array<i64: 392, 128>}, {pipeline_mode = #tpu.pipeline_mode<synchronous>, transform_indices = @transform_3, window_bounds = array<i64: 128, 512>}, {pipeline_mode = #tpu.pipeline_mode<synchronous>, transform_indices = @transform_4, window_bounds = array<i64: 3, 512>}, {pipeline_mode = #tpu.pipeline_mode<synchronous>, transform_indices = @transform_5, window_bounds = array<i64: 512, 512>}, {pipeline_mode = #tpu.pipeline_mode<synchronous>, transform_indices = @transform_6, window_bounds = array<i64: 512, 512>}, {pipeline_mode = #tpu.pipeline_mode<synchronous>, transform_indices = @transform_7, window_bounds = array<i64: 4, 512>}, {pipeline_mode = #tpu.pipeline_mode<synchronous>, transform_indices = @transform_8, window_bounds = array<i64: 1, 128>}]} {
    %c0 = arith.constant 0 : index
    %c0_0 = arith.constant 0 : index
    %0 = vector.load %arg1[%c0, %c0_0] : memref<128x392xf32, #tpu.memory_space<vmem>>, vector<128x392xf32>
    %c0_1 = arith.constant 0 : index
    %c0_2 = arith.constant 0 : index
    %1 = vector.load %arg3[%c0_1, %c0_2] : memref<392x128xf32, #tpu.memory_space<vmem>>, vector<392x128xf32>
    %cst = arith.constant dense<0.000000e+00> : vector<128x128xf32>
    %2 = tpu.matmul %0, %1, %cst {dimension_numbers = #tpu.dot_dimension_numbers<[1], [0], [0], [1], [0, 0, 1, 1], [], []>} : vector<128x392xf32>, vector<392x128xf32>, vector<128x128xf32> -> vector<128x128xf32>
    %cst_3 = arith.constant 0.000000e+00 : f32
    %3 = vector.broadcast %cst_3 : f32 to vector<128x128xf32>
    %4 = arith.maximumf %2, %3 : vector<128x128xf32>
    %5 = vector.shape_cast %4 : vector<128x128xf32> to vector<2x64x128xf32>
    %cst_4 = arith.constant dense<0.000000e+00> : vector<2x128xf32>
    %6 = vector.multi_reduction <add>, %5, %cst_4 [1] : vector<2x64x128xf32> to vector<2x128xf32>
    %cst_5 = arith.constant 6.400000e+01 : f32
    %7 = vector.broadcast %cst_5 : f32 to vector<2x128xf32>
    %8 = arith.divf %6, %7 : vector<2x128xf32>
    %c0_6 = arith.constant 0 : index
    %c0_7 = arith.constant 0 : index
    %c0_8 = arith.constant 0 : index
    %9 = vector.load %arg2[%c0_6, %c0_7, %c0_8] : memref<2x3x512xf32, #tpu.memory_space<vmem>>, vector<2x3x512xf32>
    %cst_9 = arith.constant dense<0.000000e+00> : vector<2x3xf32>
    %10 = vector.multi_reduction <add>, %9, %cst_9 [2] : vector<2x3x512xf32> to vector<2x3xf32>
    %cst_10 = arith.constant 5.120000e+02 : f32
    %11 = vector.broadcast %cst_10 : f32 to vector<2x3xf32>
    %12 = arith.divf %10, %11 : vector<2x3xf32>
    %c0_11 = arith.constant 0 : index
    %c0_12 = arith.constant 0 : index
    %13 = vector.load %arg8[%c0_11, %c0_12] : memref<4x512xf32, #tpu.memory_space<vmem>>, vector<4x512xf32>
    %14 = vector.extract_strided_slice %13 {offsets = [0, 0], sizes = [1, 512], strides = [1, 1]} : vector<4x512xf32> to vector<1x512xf32>
    %15 = vector.extract_strided_slice %13 {offsets = [1, 0], sizes = [1, 512], strides = [1, 1]} : vector<4x512xf32> to vector<1x512xf32>
    %16 = vector.extract_strided_slice %13 {offsets = [2, 0], sizes = [1, 512], strides = [1, 1]} : vector<4x512xf32> to vector<1x512xf32>
    %17 = vector.extract_strided_slice %13 {offsets = [3, 0], sizes = [1, 512], strides = [1, 1]} : vector<4x512xf32> to vector<1x512xf32>
    %18 = arith.truncf %8 : vector<2x128xf32> to vector<2x128xbf16>
    %c0_13 = arith.constant 0 : index
    %c0_14 = arith.constant 0 : index
    %19 = vector.load %arg4[%c0_13, %c0_14] : memref<128x512xbf16, #tpu.memory_space<vmem>>, vector<128x512xbf16>
    %cst_15 = arith.constant dense<0.000000e+00> : vector<2x512xf32>
    %20 = tpu.matmul %18, %19, %cst_15 {dimension_numbers = #tpu.dot_dimension_numbers<[1], [0], [0], [1], [0, 0, 1, 1], [], []>} : vector<2x128xbf16>, vector<128x512xbf16>, vector<2x512xf32> -> vector<2x512xf32>
    %21 = vector.broadcast %14 : vector<1x512xf32> to vector<2x512xf32>
    %22 = arith.addf %20, %21 : vector<2x512xf32>
    %23 = arith.mulf %22, %22 : vector<2x512xf32>
    %cst_16 = arith.constant dense<0.000000e+00> : vector<2xf32>
    %24 = vector.multi_reduction <add>, %23, %cst_16 [1] : vector<2x512xf32> to vector<2xf32>
    %25 = vector.shape_cast %24 : vector<2xf32> to vector<2x1xf32>
    %26 = math.sqrt %25 : vector<2x1xf32>
    %cst_17 = arith.constant 9.99999997E-7 : f32
    %27 = vector.broadcast %cst_17 : f32 to vector<2x1xf32>
    %28 = arith.maximumf %26, %27 : vector<2x1xf32>
    %29 = tpu.reciprocal %28 {approx = true} : vector<2x1xf32> -> vector<2x1xf32>
    %30 = vector.broadcast %29 : vector<2x1xf32> to vector<2x512xf32>
    %31 = arith.mulf %22, %30 : vector<2x512xf32>
    %c0_18 = arith.constant 0 : index
    %c0_19 = arith.constant 0 : index
    %32 = vector.load %arg5[%c0_18, %c0_19] : memref<3x512xf32, #tpu.memory_space<vmem>>, vector<3x512xf32>
    %cst_20 = arith.constant dense<0.000000e+00> : vector<2x512xf32>
    %33 = tpu.matmul %12, %32, %cst_20 {dimension_numbers = #tpu.dot_dimension_numbers<[1], [0], [0], [1], [0, 0, 1, 1], [], []>} : vector<2x3xf32>, vector<3x512xf32>, vector<2x512xf32> -> vector<2x512xf32>
    %34 = vector.broadcast %15 : vector<1x512xf32> to vector<2x512xf32>
    %35 = arith.addf %33, %34 : vector<2x512xf32>
    %36 = arith.mulf %35, %35 : vector<2x512xf32>
    %cst_21 = arith.constant dense<0.000000e+00> : vector<2xf32>
    %37 = vector.multi_reduction <add>, %36, %cst_21 [1] : vector<2x512xf32> to vector<2xf32>
    %38 = vector.shape_cast %37 : vector<2xf32> to vector<2x1xf32>
    %39 = math.sqrt %38 : vector<2x1xf32>
    %cst_22 = arith.constant 9.99999997E-7 : f32
    %40 = vector.broadcast %cst_22 : f32 to vector<2x1xf32>
    %41 = arith.maximumf %39, %40 : vector<2x1xf32>
    %42 = tpu.reciprocal %41 {approx = true} : vector<2x1xf32> -> vector<2x1xf32>
    %43 = vector.broadcast %42 : vector<2x1xf32> to vector<2x512xf32>
    %44 = arith.mulf %35, %43 : vector<2x512xf32>
    %45 = arith.truncf %44 : vector<2x512xf32> to vector<2x512xbf16>
    %c0_23 = arith.constant 0 : index
    %c0_24 = arith.constant 0 : index
    %46 = vector.load %arg6[%c0_23, %c0_24] : memref<512x512xbf16, #tpu.memory_space<vmem>>, vector<512x512xbf16>
    %cst_25 = arith.constant dense<0.000000e+00> : vector<2x512xf32>
    %47 = tpu.matmul %45, %46, %cst_25 {dimension_numbers = #tpu.dot_dimension_numbers<[1], [0], [0], [1], [0, 0, 1, 1], [], []>} : vector<2x512xbf16>, vector<512x512xbf16>, vector<2x512xf32> -> vector<2x512xf32>
    %48 = vector.broadcast %16 : vector<1x512xf32> to vector<2x512xf32>
    %49 = arith.addf %47, %48 : vector<2x512xf32>
    %50 = arith.truncf %31 : vector<2x512xf32> to vector<2x512xbf16>
    %c0_26 = arith.constant 0 : index
    %c0_27 = arith.constant 0 : index
    %51 = vector.load %arg7[%c0_26, %c0_27] : memref<512x512xbf16, #tpu.memory_space<vmem>>, vector<512x512xbf16>
    %cst_28 = arith.constant dense<0.000000e+00> : vector<2x512xf32>
    %52 = tpu.matmul %50, %51, %cst_28 {dimension_numbers = #tpu.dot_dimension_numbers<[1], [0], [0], [1], [0, 0, 1, 1], [], []>} : vector<2x512xbf16>, vector<512x512xbf16>, vector<2x512xf32> -> vector<2x512xf32>
    %53 = vector.broadcast %17 : vector<1x512xf32> to vector<2x512xf32>
    %54 = arith.addf %52, %53 : vector<2x512xf32>
    %55 = arith.mulf %49, %49 : vector<2x512xf32>
    %cst_29 = arith.constant dense<0.000000e+00> : vector<2xf32>
    %56 = vector.multi_reduction <add>, %55, %cst_29 [1] : vector<2x512xf32> to vector<2xf32>
    %57 = vector.shape_cast %56 : vector<2xf32> to vector<2x1xf32>
    %58 = math.sqrt %57 : vector<2x1xf32>
    %cst_30 = arith.constant 9.99999993E-9 : f32
    %59 = vector.broadcast %cst_30 : f32 to vector<2x1xf32>
    %60 = arith.maximumf %58, %59 : vector<2x1xf32>
    %61 = tpu.reciprocal %60 {approx = true} : vector<2x1xf32> -> vector<2x1xf32>
    %62 = vector.broadcast %61 : vector<2x1xf32> to vector<2x512xf32>
    %63 = arith.mulf %49, %62 : vector<2x512xf32>
    %64 = arith.mulf %54, %54 : vector<2x512xf32>
    %cst_31 = arith.constant dense<0.000000e+00> : vector<2xf32>
    %65 = vector.multi_reduction <add>, %64, %cst_31 [1] : vector<2x512xf32> to vector<2xf32>
    %66 = vector.shape_cast %65 : vector<2xf32> to vector<2x1xf32>
    %67 = math.sqrt %66 : vector<2x1xf32>
    %cst_32 = arith.constant 9.99999993E-9 : f32
    %68 = vector.broadcast %cst_32 : f32 to vector<2x1xf32>
    %69 = arith.maximumf %67, %68 : vector<2x1xf32>
    %70 = tpu.reciprocal %69 {approx = true} : vector<2x1xf32> -> vector<2x1xf32>
    %71 = vector.broadcast %70 : vector<2x1xf32> to vector<2x512xf32>
    %72 = arith.mulf %54, %71 : vector<2x512xf32>
    %cst_33 = arith.constant dense<0.000000e+00> : vector<2x2xf32>
    %73 = tpu.matmul %72, %63, %cst_33 {dimension_numbers = #tpu.dot_dimension_numbers<[1], [1], [0], [0], [0, 0, 1, 0], [], []>} : vector<2x512xf32>, vector<2x512xf32>, vector<2x2xf32> -> vector<2x2xf32>
    %74 = tpu.iota {dimensions = array<i32: 0>} : vector<2x2xi32>
    %75 = tpu.iota {dimensions = array<i32: 1>} : vector<2x2xi32>
    %76 = arith.cmpi eq, %74, %75 : vector<2x2xi32>
    %77 = arith.extui %76 : vector<2x2xi1> to vector<2x2xi32>
    %78 = arith.sitofp %77 : vector<2x2xi32> to vector<2x2xf32>
    %79 = arith.mulf %73, %78 : vector<2x2xf32>
    %80 = vector.shape_cast %79 : vector<2x2xf32> to vector<1x2x2xf32>
    %cst_34 = arith.constant dense<0.000000e+00> : vector<1xf32>
    %81 = vector.multi_reduction <add>, %80, %cst_34 [1, 2] : vector<1x2x2xf32> to vector<1xf32>
    %82 = vector.shape_cast %81 : vector<1xf32> to vector<1x1x1xf32>
    %83 = vector.extract %82[0, 0, 0] : f32 from vector<1x1x1xf32>
    %cst_35 = arith.constant dense<0xFF800000> : vector<2xf32>
    %84 = vector.multi_reduction <maximumf>, %73, %cst_35 [1] : vector<2x2xf32> to vector<2xf32>
    %85 = vector.shape_cast %84 : vector<2xf32> to vector<2x1xf32>
    %86 = vector.broadcast %85 : vector<2x1xf32> to vector<2x2xf32>
    %87 = arith.subf %73, %86 : vector<2x2xf32>
    %88 = math.exp %87 : vector<2x2xf32>
    %cst_36 = arith.constant dense<0.000000e+00> : vector<2xf32>
    %89 = vector.multi_reduction <add>, %88, %cst_36 [1] : vector<2x2xf32> to vector<2xf32>
    %90 = vector.shape_cast %89 : vector<2xf32> to vector<2x1xf32>
    %91 = math.log %90 : vector<2x1xf32>
    %92 = arith.addf %85, %91 : vector<2x1xf32>
    %cst_37 = arith.constant dense<0xFF800000> : vector<2xf32>
    %93 = vector.multi_reduction <maximumf>, %73, %cst_37 [0] : vector<2x2xf32> to vector<2xf32>
    %94 = vector.shape_cast %93 : vector<2xf32> to vector<1x2xf32>
    %95 = vector.broadcast %94 : vector<1x2xf32> to vector<2x2xf32>
    %96 = arith.subf %73, %95 : vector<2x2xf32>
    %97 = math.exp %96 : vector<2x2xf32>
    %cst_38 = arith.constant dense<0.000000e+00> : vector<2xf32>
    %98 = vector.multi_reduction <add>, %97, %cst_38 [0] : vector<2x2xf32> to vector<2xf32>
    %99 = vector.shape_cast %98 : vector<2xf32> to vector<1x2xf32>
    %100 = math.log %99 : vector<1x2xf32>
    %101 = arith.addf %94, %100 : vector<1x2xf32>
    %102 = vector.shape_cast %92 : vector<2x1xf32> to vector<1x2x1xf32>
    %cst_39 = arith.constant dense<0.000000e+00> : vector<1xf32>
    %103 = vector.multi_reduction <add>, %102, %cst_39 [1, 2] : vector<1x2x1xf32> to vector<1xf32>
    %104 = vector.shape_cast %103 : vector<1xf32> to vector<1x1x1xf32>
    %105 = vector.extract %104[0, 0, 0] : f32 from vector<1x1x1xf32>
    %106 = vector.shape_cast %101 : vector<1x2xf32> to vector<1x1x2xf32>
    %cst_40 = arith.constant dense<0.000000e+00> : vector<1xf32>
    %107 = vector.multi_reduction <add>, %106, %cst_40 [1, 2] : vector<1x1x2xf32> to vector<1xf32>
    %108 = vector.shape_cast %107 : vector<1xf32> to vector<1x1x1xf32>
    %109 = vector.extract %108[0, 0, 0] : f32 from vector<1x1x1xf32>
    %110 = arith.addf %105, %109 : f32
    %cst_41 = arith.constant 2.000000e+00 : f32
    %111 = arith.mulf %cst_41, %83 : f32
    %112 = arith.subf %110, %111 : f32
    %cst_42 = arith.constant 4.000000e+00 : f32
    %113 = arith.divf %112, %cst_42 : f32
    %114 = vector.broadcast %85 : vector<2x1xf32> to vector<2x2xf32>
    %115 = arith.cmpf oeq, %73, %114 : vector<2x2xf32>
    %c2_i32 = arith.constant 2 : i32
    %116 = vector.broadcast %c2_i32 : i32 to vector<2x2xi32>
    %117 = arith.select %115, %75, %116 : vector<2x2xi1>, vector<2x2xi32>
    %cst_43 = arith.constant dense<2147483647> : vector<2xi32>
    %118 = vector.multi_reduction <minsi>, %117, %cst_43 [1] : vector<2x2xi32> to vector<2xi32>
    %119 = vector.shape_cast %118 : vector<2xi32> to vector<2x1xi32>
    %120 = vector.extract_strided_slice %74 {offsets = [0, 0], sizes = [2, 1], strides = [1, 1]} : vector<2x2xi32> to vector<2x1xi32>
    %121 = arith.cmpi eq, %119, %120 : vector<2x1xi32>
    %122 = arith.extui %121 : vector<2x1xi1> to vector<2x1xi32>
    %123 = arith.sitofp %122 : vector<2x1xi32> to vector<2x1xf32>
    %124 = vector.shape_cast %123 : vector<2x1xf32> to vector<1x2x1xf32>
    %cst_44 = arith.constant dense<0.000000e+00> : vector<1xf32>
    %125 = vector.multi_reduction <add>, %124, %cst_44 [1, 2] : vector<1x2x1xf32> to vector<1xf32>
    %126 = vector.shape_cast %125 : vector<1xf32> to vector<1x1x1xf32>
    %127 = vector.extract %126[0, 0, 0] : f32 from vector<1x1x1xf32>
    %cst_45 = arith.constant 2.000000e+00 : f32
    %128 = arith.divf %127, %cst_45 : f32
    %129 = vector.broadcast %94 : vector<1x2xf32> to vector<2x2xf32>
    %130 = arith.cmpf oeq, %73, %129 : vector<2x2xf32>
    %c2_i32_46 = arith.constant 2 : i32
    %131 = vector.broadcast %c2_i32_46 : i32 to vector<2x2xi32>
    %132 = arith.select %130, %74, %131 : vector<2x2xi1>, vector<2x2xi32>
    %cst_47 = arith.constant dense<2147483647> : vector<2xi32>
    %133 = vector.multi_reduction <minsi>, %132, %cst_47 [0] : vector<2x2xi32> to vector<2xi32>
    %134 = vector.shape_cast %133 : vector<2xi32> to vector<1x2xi32>
    %135 = vector.extract_strided_slice %75 {offsets = [0, 0], sizes = [1, 2], strides = [1, 1]} : vector<2x2xi32> to vector<1x2xi32>
    %136 = arith.cmpi eq, %134, %135 : vector<1x2xi32>
    %137 = arith.extui %136 : vector<1x2xi1> to vector<1x2xi32>
    %138 = arith.sitofp %137 : vector<1x2xi32> to vector<1x2xf32>
    %139 = vector.shape_cast %138 : vector<1x2xf32> to vector<1x1x2xf32>
    %cst_48 = arith.constant dense<0.000000e+00> : vector<1xf32>
    %140 = vector.multi_reduction <add>, %139, %cst_48 [1, 2] : vector<1x1x2xf32> to vector<1xf32>
    %141 = vector.shape_cast %140 : vector<1xf32> to vector<1x1x1xf32>
    %142 = vector.extract %141[0, 0, 0] : f32 from vector<1x1x1xf32>
    %cst_49 = arith.constant 2.000000e+00 : f32
    %143 = arith.divf %142, %cst_49 : f32
    %144 = tpu.iota {dimensions = array<i32: 1>} : vector<1x128xi32>
    %c0_i32 = arith.constant 0 : i32
    %145 = vector.broadcast %c0_i32 : i32 to vector<1x128xi32>
    %146 = arith.cmpi eq, %144, %145 : vector<1x128xi32>
    %c1_i32 = arith.constant 1 : i32
    %147 = vector.broadcast %c1_i32 : i32 to vector<1x128xi32>
    %148 = arith.cmpi eq, %144, %147 : vector<1x128xi32>
    %c2_i32_50 = arith.constant 2 : i32
    %149 = vector.broadcast %c2_i32_50 : i32 to vector<1x128xi32>
    %150 = arith.cmpi eq, %144, %149 : vector<1x128xi32>
    %cst_51 = arith.constant 0.000000e+00 : f32
    %151 = vector.broadcast %128 : f32 to vector<1x128xf32>
    %152 = vector.broadcast %cst_51 : f32 to vector<1x128xf32>
    %153 = arith.select %150, %151, %152 : vector<1x128xi1>, vector<1x128xf32>
    %154 = vector.broadcast %143 : f32 to vector<1x128xf32>
    %155 = arith.select %148, %154, %153 : vector<1x128xi1>, vector<1x128xf32>
    %156 = vector.broadcast %113 : f32 to vector<1x128xf32>
    %157 = arith.select %146, %156, %155 : vector<1x128xi1>, vector<1x128xf32>
    %c0_52 = arith.constant 0 : index
    %c0_53 = arith.constant 0 : index
    %158 = vector.load %arg9[%c0_52, %c0_53] : memref<1x128xf32, #tpu.memory_space<vmem>>, vector<1x128xf32>
    tpu.vector_store %arg9[%c0_52, %c0_53], %157 {strides = array<i32>} : memref<1x128xf32, #tpu.memory_space<vmem>>, vector<1x128xf32>,
    return
  }
  func.func @transform_0(%arg0: i32) -> (i32, i32) {
    %c0_i32 = arith.constant 0 : i32
    %c0_i32_0 = arith.constant 0 : i32
    %c0_i32_1 = arith.constant 0 : i32
    return %c0_i32, %c0_i32_0 : i32, i32
  }
  func.func @transform_1(%arg0: i32) -> (i32, i32, i32) {
    %c0_i32 = arith.constant 0 : i32
    %c0_i32_0 = arith.constant 0 : i32
    %c0_i32_1 = arith.constant 0 : i32
    %c0_i32_2 = arith.constant 0 : i32
    return %c0_i32, %c0_i32_0, %c0_i32_1 : i32, i32, i32
  }
  func.func @transform_2(%arg0: i32) -> (i32, i32) {
    %c0_i32 = arith.constant 0 : i32
    %c0_i32_0 = arith.constant 0 : i32
    %c0_i32_1 = arith.constant 0 : i32
    return %c0_i32, %c0_i32_0 : i32, i32
  }
  func.func @transform_3(%arg0: i32) -> (i32, i32) {
    %c0_i32 = arith.constant 0 : i32
    %c0_i32_0 = arith.constant 0 : i32
    %c0_i32_1 = arith.constant 0 : i32
    return %c0_i32, %c0_i32_0 : i32, i32
  }
  func.func @transform_4(%arg0: i32) -> (i32, i32) {
    %c0_i32 = arith.constant 0 : i32
    %c0_i32_0 = arith.constant 0 : i32
    %c0_i32_1 = arith.constant 0 : i32
    return %c0_i32, %c0_i32_0 : i32, i32
  }
  func.func @transform_5(%arg0: i32) -> (i32, i32) {
    %c0_i32 = arith.constant 0 : i32
    %c0_i32_0 = arith.constant 0 : i32
    %c0_i32_1 = arith.constant 0 : i32
    return %c0_i32, %c0_i32_0 : i32, i32
  }
  func.func @transform_6(%arg0: i32) -> (i32, i32) {
    %c0_i32 = arith.constant 0 : i32
    %c0_i32_0 = arith.constant 0 : i32
    %c0_i32_1 = arith.constant 0 : i32
    return %c0_i32, %c0_i32_0 : i32, i32
  }
  func.func @transform_7(%arg0: i32) -> (i32, i32) {
    %c0_i32 = arith.constant 0 : i32
    %c0_i32_0 = arith.constant 0 : i32
    %c0_i32_1 = arith.constant 0 : i32
    return %c0_i32, %c0_i32_0 : i32, i32
  }
  func.func @transform_8(%arg0: i32) -> (i32, i32) {
    %c0_i32 = arith.constant 0 : i32
    %c0_i32_0 = arith.constant 0 : i32
    %c0_i32_1 = arith.constant 0 : i32
    return %c0_i32, %c0_i32_0 : i32, i32
  }
}

</mosaic_0001>

<bundles_post_ra>
// kernel: integ_model_forward.1
= control target key start
LH: loop header
LB: loop body
LE: loop exit
PB: predicated region body
PF: predicated region fallthrough
CT: control target
= control target key end

     0   :  { %v4389_v2 = vmov 0.0|0.0   ;;  %vm143_vm0 = vcmask 64512   ;;  %vm543_vm1 = vcmask 1042432   ;;  %vm643_vm2 = vcmask 1041409   ;;  %s5839_s2 = inlined_call_operand.vmem [shape: f32[392,128], index: 2, kind: input, shape index: {}]   ;;  %s5840_s0 = inlined_call_operand.vmem [shape: f32[128,392], index: 0, kind: input, shape index: {}]   ;;  %s5841_s1 = inlined_call_operand.vmem [shape: f32[2,3,512], index: 1, kind: input, shape index: {}]   ;;  %s5842_s3 = inlined_call_operand.vmem [shape: bf16[128,512], index: 3, kind: input, shape index: {}]   ;;  %s5843_s4 = inlined_call_operand.vmem [shape: f32[3,512], index: 4, kind: input, shape index: {}]   ;;  %s5844_s5 = inlined_call_operand.vmem [shape: bf16[512,512], index: 5, kind: input, shape index: {}]   ;;  %s5845_s7 = inlined_call_operand.vmem [shape: f32[4,512], index: 7, kind: input, shape index: {}]   ;;  %s5846_s6 = inlined_call_operand.vmem [shape: bf16[512,512], index: 6, kind: input, shape index: {}]   ;;  %s5847_s8 = inlined_call_operand.vmem [shape: f32[1,128], index: 8, kind: output, shape index: {}]  }
   0x1   :  { %v110_v0 = vld [vmem:[%s5839_s2 + $0x80] sm:$0xff]  ;;  %v111_v1 = vld [vmem:[%s5839_s2 + $0x88] sm:$0xff]  ;;  %3862 = vmatprep.subr.bf16.mxu1 %v4389_v2  ;;  %v112_v10 = vld [vmem:[%s5839_s2 + $0x90] sm:$0xff]  ;;  %vm971_vm3 = vcmask 23552   ;;  %vm893_vm4 = vcmask 1041408   ;;  %vm3292_vm13 = vcmask 9216  }
   0x2   :  { %v94_v3 = vld [vmem:[%s5839_s2] sm:$0xff]  ;;  %v3830_v4 = vpack.c.bf16 %v111_v1, %v110_v0  ;;  %v95_v5 = vld [vmem:[%s5839_s2 + $0x8] sm:$0xff]  ;;  %v113_v11 = vld [vmem:[%s5839_s2 + $0x98] sm:$0xff] }
   0x3   :  { %v126_v6 = vld [vmem:[%s5839_s2 + $0x100] sm:$0xff]  ;;  %v127_v7 = vld [vmem:[%s5839_s2 + $0x108] sm:$0xff]  ;;  %v3832_v8 = vpack.c.bf16 %v95_v5, %v94_v3  ;;  %v96_v12 = vld [vmem:[%s5839_s2 + $0x10] sm:$0xff]  ;;  %v3834_v13 = vpack.c.bf16 %v113_v11, %v112_v10 }
   0x4   :  { %v3863_v9 = vpack.c.bf16 %v127_v7, %v126_v6  ;;  %3831 = vmatprep.subr.bf16.mxu0 %v3830_v4  ;;  %v97_v14 = vld [vmem:[%s5839_s2 + $0x18] sm:$0xff]  ;;  %v128_v15 = vld [vmem:[%s5839_s2 + $0x110] sm:$0xff]  ;;  %v114_v19 = vld [vmem:[%s5839_s2 + $0xa0] sm:$0xff] }
   0x5   :  { %v129_v16 = vld [vmem:[%s5839_s2 + $0x118] sm:$0xff]  ;;  %3833 = vmatpush3.bf16.msra.mxu0 %v3832_v8  ;;  %v3836_v17 = vpack.c.bf16 %v97_v14, %v96_v12  ;;  %v115_v20 = vld [vmem:[%s5839_s2 + $0xa8] sm:$0xff]  ;;  %v98_v21 = vld [vmem:[%s5839_s2 + $0x20] sm:$0xff] }
   0x6   :  { %3864 = vmatpush1.bf16.msra.mxu1 %v3863_v9  ;;  %v3866_v18 = vpack.c.bf16 %v129_v16, %v128_v15  ;;  %3835 = vmatprep.subr.bf16.mxu0 %v3834_v13  ;;  %v3838_v22 = vpack.c.bf16 %v115_v20, %v114_v19  ;;  %v99_v23 = vld [vmem:[%s5839_s2 + $0x28] sm:$0xff]  ;;  %v130_v24 = vld [vmem:[%s5839_s2 + $0x120] sm:$0xff]  ;;  %v116_v26 = vld [vmem:[%s5839_s2 + $0xb0] sm:$0xff]  ;;  %v4390_v13 = vmov 0.0  }
   0x7   :  { %3865 = vmatprep.subr.bf16.mxu1 %v4389_v2  ;;  %v131_v25 = vld [vmem:[%s5839_s2 + $0x128] sm:$0xff]  ;;  %v117_v27 = vld [vmem:[%s5839_s2 + $0xb8] sm:$0xff]  ;;  %v3840_v28 = vpack.c.bf16 %v99_v23, %v98_v21  ;;  %v100_v30 = vld [vmem:[%s5839_s2 + $0x30] sm:$0xff] }
   0x8   :  { %v3869_v29 = vpack.c.bf16 %v131_v25, %v130_v24  ;;  %v3842_v31 = vpack.c.bf16 %v117_v27, %v116_v26  ;;  %v101_v32 = vld [vmem:[%s5839_s2 + $0x38] sm:$0xff]  ;;  %v132_v33 = vld [vmem:[%s5839_s2 + $0x130] sm:$0xff]  ;;  %v118_v35 = vld [vmem:[%s5839_s2 + $0xc0] sm:$0xff] }
   0x9   :  { %3837 = vmatpush3.bf16.msra.mxu0 %v3836_v17  ;;  %v133_v34 = vld [vmem:[%s5839_s2 + $0x138] sm:$0xff]  ;;  %v119_v36 = vld [vmem:[%s5839_s2 + $0xc8] sm:$0xff]  ;;  %v3844_v37 = vpack.c.bf16 %v101_v32, %v100_v30  ;;  %v102_v39 = vld [vmem:[%s5839_s2 + $0x40] sm:$0xff] }
   0xa   :  { %3867 = vmatpush1.bf16.msra.mxu1 %v3866_v18  ;;  %3839 = vmatprep.subr.bf16.mxu0 %v3838_v22  ;;  %v3872_v38 = vpack.c.bf16 %v133_v34, %v132_v33  ;;  %v3846_v40 = vpack.c.bf16 %v119_v36, %v118_v35  ;;  %v103_v41 = vld [vmem:[%s5839_s2 + $0x48] sm:$0xff]  ;;  %v134_v42 = vld [vmem:[%s5839_s2 + $0x140] sm:$0xff]  ;;  %v120_v44 = vld [vmem:[%s5839_s2 + $0xd0] sm:$0xff] }
   0xb   :  { %3868 = vmatprep.subr.bf16.mxu1 %v4389_v2  ;;  %v135_v43 = vld [vmem:[%s5839_s2 + $0x148] sm:$0xff]  ;;  %v121_v45 = vld [vmem:[%s5839_s2 + $0xd8] sm:$0xff]  ;;  %v3848_v46 = vpack.c.bf16 %v103_v41, %v102_v39  ;;  %v104_v48 = vld [vmem:[%s5839_s2 + $0x50] sm:$0xff] }
   0xc   :  { %v3875_v47 = vpack.c.bf16 %v135_v43, %v134_v42  ;;  %v105_v49 = vld [vmem:[%s5839_s2 + $0x58] sm:$0xff]  ;;  %v31_v50 = vld [vmem:[%s5840_s0 + $0x8] sm:$0xff]  ;;  %v3850_v51 = vpack.c.bf16 %v121_v45, %v120_v44  ;;  %v136_v52 = vld [vmem:[%s5839_s2 + $0x150] sm:$0xff] }
   0xd   :  { %3841 = vmatpush3.bf16.msra.mxu0 %v3840_v28  ;;  %v137_v53 = vld [vmem:[%s5839_s2 + $0x158] sm:$0xff]  ;;  %v122_v55 = vld [vmem:[%s5839_s2 + $0xe0] sm:$0xff]  ;;  %v123_v56 = vld [vmem:[%s5839_s2 + $0xe8] sm:$0xff]  ;;  %256 = vmatprep.mubr.f32.mxu0 %v31_v50  ;;  %v3852_v57 = vpack.c.bf16 %v105_v49, %v104_v48 }
   0xe   :  { %3870 = vmatpush1.bf16.msra.mxu1 %v3869_v29  ;;  %3843 = vmatprep.subr.bf16.mxu0 %v3842_v31  ;;  %v33_v54 = vld [vmem:[%s5840_s0 + $0x18] sm:$0xff]  ;;  %v3878_v58 = vpack.c.bf16 %v137_v53, %v136_v52  ;;  %v106_v59 = vld [vmem:[%s5839_s2 + $0x60] sm:$0xff]  ;;  %v3854_v60 = vpack.c.bf16 %v123_v56, %v122_v55  ;;  %v107_v61 = vld [vmem:[%s5839_s2 + $0x68] sm:$0xff] }
   0xf   :  { %3871 = vmatprep.subr.bf16.mxu1 %v4389_v2  ;;  %3437 = vmatprep.mubr.msk.f32.mxu1 %vm143_vm0, %v33_v54  ;;  %v138_v62 = vld [vmem:[%s5839_s2 + $0x160] sm:$0xff]  ;;  %v139_v63 = vld [vmem:[%s5839_s2 + $0x168] sm:$0xff]  ;;  %v124_v0 = vld [vmem:[%s5839_s2 + $0xf0] sm:$0xff]  ;;  %v3856_v3 = vpack.c.bf16 %v107_v61, %v106_v59 }
  0x10   :  { %v125_v1 = vld [vmem:[%s5839_s2 + $0xf8] sm:$0xff]  ;;  %v3881_v4 = vpack.c.bf16 %v139_v63, %v138_v62  ;;  %v108_v5 = vld [vmem:[%s5839_s2 + $0x70] sm:$0xff]  ;;  %v30_v12 = vld [vmem:[%s5840_s0] sm:$0xff] }
  0x11   :  { %3845 = vmatpush3.bf16.msra.mxu0 %v3844_v37  ;;  %v3858_v6 = vpack.c.bf16 %v125_v1, %v124_v0  ;;  %v109_v7 = vld [vmem:[%s5839_s2 + $0x78] sm:$0xff]  ;;  %v140_v8 = vld [vmem:[%s5839_s2 + $0x170] sm:$0xff]  ;;  %v142_v14 = vld [vmem:[%s5839_s2 + $0x180] sm:$0xff] }
  0x12   :  { %3873 = vmatpush1.bf16.msra.mxu1 %v3872_v38  ;;  %3847 = vmatprep.subr.bf16.mxu0 %v3846_v40  ;;  %v141_v9 = vld [vmem:[%s5839_s2 + $0x178] sm:$0xff]  ;;  %v3860_v10 = vpack.c.bf16 %v109_v7, %v108_v5  ;;  %v35_v15 = vld [vmem:[%s5840_s0 + $0x28] sm:$0xff]  ;;  %v34_v17 = vld [vmem:[%s5840_s0 + $0x20] sm:$0xff] }
  0x13   :  { %3874 = vmatprep.subr.bf16.mxu1 %v4389_v2  ;;  %v3884_v11 = vpack.c.bf16 %v141_v9, %v140_v8  ;;  %v37_v16 = vld [vmem:[%s5840_s0 + $0x38] sm:$0xff]  ;;  %v39_v18 = vld [vmem:[%s5840_s0 + $0x48] sm:$0xff]  ;;  %v527_v19 = vld [vmem:[%s5841_s1] sm:$0x77] }
  0x14   :  { %v36_v20 = vld [vmem:[%s5840_s0 + $0x30] sm:$0xff]  ;;  %v528_v21 = vld [vmem:[%s5841_s1 + $0x8] sm:$0x77]  ;;  %v535_v22 = vcombine.high %v527_v19, %v527_v19  ;;  %v544_v23 = vsel %vm543_vm1, %v527_v19, 0.0  ;;  %v41_v25 = vld [vmem:[%s5840_s0 + $0x58] sm:$0xff] }
  0x15   :  { %3849 = vmatpush3.bf16.msra.mxu0 %v3848_v46  ;;  %v529_v24 = vld [vmem:[%s5841_s1 + $0x10] sm:$0x77]  ;;  %v536_v26 = vcombine.high %v528_v21, %v528_v21  ;;  %v530_v27 = vld [vmem:[%s5841_s1 + $0x18] sm:$0x77]  ;;  %v38_v30 = vld [vmem:[%s5840_s0 + $0x40] sm:$0xff]  ;;  %v547_v32 = vsel %vm543_vm1, %v528_v21, 0.0 }
  0x16   :  { %3876 = vmatpush1.bf16.msra.mxu1 %v3875_v47  ;;  %3851 = vmatprep.subr.bf16.mxu0 %v3850_v51  ;;  %v537_v28 = vcombine.high %v529_v24, %v529_v24  ;;  %v553_v29 = vsel %vm543_vm1, %v529_v24, 0.0  ;;  %v545_v31 = vsel %vm543_vm1, %v535_v22, 0.0  ;;  %v538_v33 = vcombine.high %v530_v27, %v530_v27  ;;  %v43_v34 = vld [vmem:[%s5840_s0 + $0x68] sm:$0xff]  ;;  %v40_v38 = vld [vmem:[%s5840_s0 + $0x50] sm:$0xff]  ;;  %v45_v41 = vld [vmem:[%s5840_s0 + $0x78] sm:$0xff] }
  0x17   :  { %3877 = vmatprep.subr.bf16.mxu1 %v4389_v2  ;;  %v546_v35 = vadd.f32 %v545_v31, %v544_v23  ;;  %v556_v37 = vsel %vm543_vm1, %v530_v27, 0.0  ;;  %v549_v39 = vsel %vm543_vm1, %v536_v26, 0.0  ;;  %v42_v43 = vld [vmem:[%s5840_s0 + $0x60] sm:$0xff]  ;;  %v47_v46 = vld [vmem:[%s5840_s0 + $0x88] sm:$0xff]  ;;  %v44_v48 = vld [vmem:[%s5840_s0 + $0x70] sm:$0xff] }
  0x18   :  { %v554_v36 = vsel %vm543_vm1, %v537_v28, 0.0  ;;  %v558_v45 = vsel %vm543_vm1, %v538_v33, 0.0  ;;  %v49_v49 = vld [vmem:[%s5840_s0 + $0x98] sm:$0xff]  ;;  %v46_v51 = vld [vmem:[%s5840_s0 + $0x80] sm:$0xff]  ;;  %v51_v52 = vld [vmem:[%s5840_s0 + $0xa8] sm:$0xff] }
  0x19   :  { %3853 = vmatpush3.bf16.msra.mxu0 %v3852_v57  ;;  %v555_v40 = vadd.f32 %v554_v36, %v553_v29  ;;  %v548_v42 = vadd.f32 %v547_v32, %v546_v35  ;;  %v48_v53 = vld [vmem:[%s5840_s0 + $0x90] sm:$0xff]  ;;  %v53_v54 = vld [vmem:[%s5840_s0 + $0xb8] sm:$0xff]  ;;  %v50_v55 = vld [vmem:[%s5840_s0 + $0xa0] sm:$0xff] }
  0x1a   :  { %3879 = vmatpush1.bf16.msra.mxu1 %v3878_v58  ;;  %3855 = vmatprep.subr.bf16.mxu0 %v3854_v60  ;;  %v55_v56 = vld [vmem:[%s5840_s0 + $0xc8] sm:$0xff]  ;;  %v52_v57 = vld [vmem:[%s5840_s0 + $0xb0] sm:$0xff]  ;;  %v57_v58 = vld [vmem:[%s5840_s0 + $0xd8] sm:$0xff] }
  0x1b   :  { %3880 = vmatprep.subr.bf16.mxu1 %v4389_v2  ;;  %v557_v44 = vadd.f32 %v556_v37, %v555_v40  ;;  %v550_v47 = vadd.f32 %v549_v39, %v548_v42  ;;  %v54_v59 = vld [vmem:[%s5840_s0 + $0xc0] sm:$0xff]  ;;  %v59_v60 = vld [vmem:[%s5840_s0 + $0xe8] sm:$0xff]  ;;  %v56_v61 = vld [vmem:[%s5840_s0 + $0xd0] sm:$0xff] }
  0x1c   :  { %v61_v62 = vld [vmem:[%s5840_s0 + $0xf8] sm:$0xff]  ;;  %v58_v63 = vld [vmem:[%s5840_s0 + $0xe0] sm:$0xff]  ;;  %v63_v0 = vld [vmem:[%s5840_s0 + $0x108] sm:$0xff] }
  0x1d   :  { %3857 = vmatpush3.bf16.msra.mxu0 %v3856_v3  ;;  %551 = vadd.xlane.f32.xlu0 %v550_v47  ;;  %v559_v50 = vadd.f32 %v558_v45, %v557_v44  ;;  %v60_v1 = vld [vmem:[%s5840_s0 + $0xf0] sm:$0xff]  ;;  %v65_v3 = vld [vmem:[%s5840_s0 + $0x118] sm:$0xff]  ;;  %v67_v5 = vld [vmem:[%s5840_s0 + $0x128] sm:$0xff] }
  0x1e   :  { %3882 = vmatpush1.bf16.msra.mxu1 %v3881_v4  ;;  %3859 = vmatprep.subr.bf16.mxu0 %v3858_v6  ;;  %v62_v4 = vld [vmem:[%s5840_s0 + $0x100] sm:$0xff]  ;;  %v64_v6 = vld [vmem:[%s5840_s0 + $0x110] sm:$0xff]  ;;  %v69_v7 = vld [vmem:[%s5840_s0 + $0x138] sm:$0xff] }
  0x1f   :  { %3883 = vmatprep.subr.bf16.mxu1 %v4389_v2  ;;  %v32_v2 = vld [vmem:[%s5840_s0 + $0x10] sm:$0xff]  ;;  %v66_v8 = vld [vmem:[%s5840_s0 + $0x120] sm:$0xff]  ;;  %v71_v9 = vld [vmem:[%s5840_s0 + $0x148] sm:$0xff] }
  0x20   :  { %v81_v19 = vld [vmem:[%s5840_s0 + $0x198] sm:$0xff]  ;;  %v83_v21 = vld [vmem:[%s5840_s0 + $0x1a8] sm:$0xff]  ;;  %v80_v22 = vld [vmem:[%s5840_s0 + $0x190] sm:$0xff] }
  0x21   :  { %3861 = vmatpush3.bf16.msra.mxu0 %v3860_v10  ;;  %560 = vadd.xlane.f32.xlu0 %v559_v50  ;;  %v68_v10 = vld [vmem:[%s5840_s0 + $0x130] sm:$0xff]  ;;  %v85_v23 = vld [vmem:[%s5840_s0 + $0x1b8] sm:$0xff]  ;;  %v82_v24 = vld [vmem:[%s5840_s0 + $0x1a0] sm:$0xff] }
  0x22   :  { %3885 = vmatpush1.bf16.msra.mxu1 %v3884_v11  ;;  %v73_v11 = vld [vmem:[%s5840_s0 + $0x158] sm:$0xff]  ;;  %v84_v26 = vld [vmem:[%s5840_s0 + $0x1b0] sm:$0xff]  ;;  %v86_v28 = vld [vmem:[%s5840_s0 + $0x1c0] sm:$0xff] }
  0x23   :  { %369 = vmatprep.subr.mxu1 %v4390_v13  ;;  %v89_v27 = vld [vmem:[%s5840_s0 + $0x1d8] sm:$0xff]  ;;  %v91_v29 = vld [vmem:[%s5840_s0 + $0x1e8] sm:$0xff]  ;;  %v90_v32 = vld [vmem:[%s5840_s0 + $0x1e0] sm:$0xff] }
  0x24   :  { %257 = vmatmul.mubr.f32.vlgmr.msra.gmra.mrb[0].mxu0 %v30_v12  ;;  %v70_v12 = vld [vmem:[%s5840_s0 + $0x140] sm:$0xff]  ;;  %v93_v31 = vld [vmem:[%s5840_s0 + $0x1f8] sm:$0xff]  ;;  %v92_v33 = vld [vmem:[%s5840_s0 + $0x1f0] sm:$0xff] }
  0x25   :  { %261 = vmatprep.mubr.f32.mxu0 %v35_v15  ;;  %v72_v15 = vld [vmem:[%s5840_s0 + $0x150] sm:$0xff]  ;;  %v3931_v35 = vld [vmem:[%s5842_s3 + $0xc] ss:$16 sps:$4 sm:$0xff]   ;;  %v3932_v36 = vld [vmem:[%s5842_s3 + $0x28] ss:$16 sps:$4 sm:$0xff]  }
  0x26   :  { %370 = vmatpush1.msra.mxu1 %v142_v14  ;;  %v75_v14 = vld [vmem:[%s5840_s0 + $0x168] sm:$0xff]  ;;  %v3946_v40 = vld [vmem:[%s5842_s3 + $0x4] ss:$16 sps:$4 sm:$0xff]   ;;  %v3944_v42 = vld [vmem:[%s5842_s3] ss:$16 sps:$4 sm:$0xff]  }
  0x27   :  { %402 = vmatmul.mubr.f32.vlgmr.msra.gmra.mrb[0].mxu1 %v32_v2  ;;  %v77_v2 = vld [vmem:[%s5840_s0 + $0x178] sm:$0xff]  ;;  %848 = vmatprep.subr.bf16.mxu1 %v3931_v35  ;;  %v3949_v44 = vld [vmem:[%s5842_s3 + $0x24] ss:$16 sps:$4 sm:$0xff]   ;;  %v3947_v45 = vld [vmem:[%s5842_s3 + $0x20] ss:$16 sps:$4 sm:$0xff]  }
  0x28   :  { %3438 = vmatprep.mubr.msk.f32.mxu1 %vm143_vm0, %v37_v16  ;;  %262 = vmatmul.mubr.f32.gmra.mrb[2].mxu0 %v34_v17  ;;  %v74_v16 = vld [vmem:[%s5840_s0 + $0x160] sm:$0xff]  ;;  %v79_v17 = vld [vmem:[%s5840_s0 + $0x188] sm:$0xff] }
  0x29   :  { %266 = vmatprep.mubr.f32.mxu0 %v39_v18  ;;  %v76_v18 = vld [vmem:[%s5840_s0 + $0x170] sm:$0xff]  ;;  %v3934_v37 = vld [vmem:[%s5842_s3 + $0x2c] ss:$16 sps:$4 sm:$0xff]   ;;  %v3935_v39 = vld [vmem:[%s5842_s3 + $0x48] ss:$16 sps:$4 sm:$0xff]   ;;  %807 = vmatprep.subr.bf16.mxu0 %v3946_v40 }
  0x2a   :  { %808 = vmatpush1.bf16.msra.mxu0 %v3944_v42  ;;  %v3941_v47 = vld [vmem:[%s5842_s3 + $0x88] ss:$16 sps:$4 sm:$0xff]   ;;  %v3958_v50 = vld [vmem:[%s5842_s3 + $0x64] ss:$16 sps:$4 sm:$0xff]  }
  0x2b   :  { %407 = vmatmul.mubr.f32.gmra.mrb[2].mxu1 %v36_v20  ;;  %v78_v20 = vld [vmem:[%s5840_s0 + $0x180] sm:$0xff]  ;;  %809 = vmatprep.subr.bf16.mxu0 %v3949_v44 }
  0x2c   :  { %3439 = vmatprep.mubr.msk.f32.mxu1 %vm143_vm0, %v41_v25  ;;  %267 = vmatmul.mubr.f32.gmra.mrb[4].mxu0 %v38_v30  ;;  %v87_v25 = vld [vmem:[%s5840_s0 + $0x1c8] sm:$0xff]  ;;  %v88_v30 = vld [vmem:[%s5840_s0 + $0x1d0] sm:$0xff] }
  0x2d   :  { %271 = vmatprep.mubr.f32.mxu0 %v43_v34  ;;  %v3929_v34 = vld [vmem:[%s5842_s3 + $0x8] ss:$16 sps:$4 sm:$0xff]  }
  0x2e   :  { %849 = vmatpush1.bf16.msra.mxu1 %v3929_v34  ;;  %810 = vmatpush1.bf16.msra.mxu0 %v3947_v45 }
  0x2f   :  { %412 = vmatmul.mubr.f32.gmra.mrb[4].mxu1 %v40_v38  ;;  %v3937_v38 = vld [vmem:[%s5842_s3 + $0x4c] ss:$16 sps:$4 sm:$0xff]   ;;  %850 = vmatprep.subr.bf16.mxu1 %v3934_v37 }
  0x30   :  { %3440 = vmatprep.mubr.msk.f32.mxu1 %vm143_vm0, %v45_v41  ;;  %272 = vmatmul.mubr.f32.gmra.mrb[6].mxu0 %v42_v43  ;;  %v3940_v41 = vld [vmem:[%s5842_s3 + $0x6c] ss:$16 sps:$4 sm:$0xff]   ;;  %v3938_v43 = vld [vmem:[%s5842_s3 + $0x68] ss:$16 sps:$4 sm:$0xff]  }
  0x31   :  { %276 = vmatprep.mubr.f32.mxu0 %v47_v46  ;;  %v3943_v46 = vld [vmem:[%s5842_s3 + $0x8c] ss:$16 sps:$4 sm:$0xff]  }
  0x32   :  { %851 = vmatpush1.bf16.msra.mxu1 %v3932_v36 }
  0x33   :  { %417 = vmatmul.mubr.f32.gmra.mrb[6].mxu1 %v44_v48  ;;  %852 = vmatprep.subr.bf16.mxu1 %v3937_v38  ;;  %v3955_v48 = vld [vmem:[%s5842_s3 + $0x44] ss:$16 sps:$4 sm:$0xff]  }
  0x34   :  { %3441 = vmatprep.mubr.msk.f32.mxu1 %vm143_vm0, %v49_v49  ;;  %277 = vmatmul.mubr.f32.gmra.mrb[8].mxu0 %v46_v51  ;;  %v3953_v49 = vld [vmem:[%s5842_s3 + $0x40] ss:$16 sps:$4 sm:$0xff]  }
  0x35   :  { %281 = vmatprep.mubr.f32.mxu0 %v51_v52  ;;  %811 = vmatprep.subr.bf16.mxu0 %v3955_v48  ;;  %v3956_v51 = vld [vmem:[%s5842_s3 + $0x60] ss:$16 sps:$4 sm:$0xff]   ;;  %v3964_v52 = vld [vmem:[%s5842_s3 + $0x84] ss:$16 sps:$4 sm:$0xff]  }
  0x36   :  { %853 = vmatpush1.bf16.msra.mxu1 %v3935_v39  ;;  %812 = vmatpush1.bf16.msra.mxu0 %v3953_v49 }
  0x37   :  { %422 = vmatmul.mubr.f32.gmra.mrb[8].mxu1 %v48_v53  ;;  %854 = vmatprep.subr.bf16.mxu1 %v3940_v41  ;;  %v3962_v53 = vld [vmem:[%s5842_s3 + $0x80] ss:$16 sps:$4 sm:$0xff]  }
  0x38   :  { %3442 = vmatprep.mubr.msk.f32.mxu1 %vm143_vm0, %v53_v54  ;;  %282 = vmatmul.mubr.f32.gmra.mrb[10].mxu0 %v50_v55  ;;  %v3952_v54 = vld [vmem:[%s5842_s3 + $0xac] ss:$16 sps:$4 sm:$0xff]   ;;  %v3967_v55 = vld [vmem:[%s5842_s3 + $0xa4] ss:$16 sps:$4 sm:$0xff]  }
  0x39   :  { %286 = vmatprep.mubr.f32.mxu0 %v55_v56  ;;  %813 = vmatprep.subr.bf16.mxu0 %v3958_v50  ;;  %v3950_v56 = vld [vmem:[%s5842_s3 + $0xa8] ss:$16 sps:$4 sm:$0xff]  }
  0x3a   :  { %855 = vmatpush1.bf16.msra.mxu1 %v3938_v43  ;;  %814 = vmatpush1.bf16.msra.mxu0 %v3956_v51 }
  0x3b   :  { %427 = vmatmul.mubr.f32.gmra.mrb[10].mxu1 %v52_v57  ;;  %856 = vmatprep.subr.bf16.mxu1 %v3943_v46  ;;  %v3965_v57 = vld [vmem:[%s5842_s3 + $0xa0] ss:$16 sps:$4 sm:$0xff]  }
  0x3c   :  { %3443 = vmatprep.mubr.msk.f32.mxu1 %vm143_vm0, %v57_v58  ;;  %287 = vmatmul.mubr.f32.gmra.mrb[12].mxu0 %v54_v59  ;;  %v3961_v58 = vld [vmem:[%s5842_s3 + $0xcc] ss:$16 sps:$4 sm:$0xff]   ;;  %v3973_v59 = vld [vmem:[%s5842_s3 + $0xc4] ss:$16 sps:$4 sm:$0xff]  }
  0x3d   :  { %291 = vmatprep.mubr.f32.mxu0 %v59_v60  ;;  %815 = vmatprep.subr.bf16.mxu0 %v3964_v52  ;;  %v3959_v60 = vld [vmem:[%s5842_s3 + $0xc8] ss:$16 sps:$4 sm:$0xff]  }
  0x3e   :  { %857 = vmatpush1.bf16.msra.mxu1 %v3941_v47  ;;  %816 = vmatpush1.bf16.msra.mxu0 %v3962_v53 }
  0x3f   :  { %432 = vmatmul.mubr.f32.gmra.mrb[12].mxu1 %v56_v61  ;;  %858 = vmatprep.subr.bf16.mxu1 %v3952_v54  ;;  %v3971_v61 = vld [vmem:[%s5842_s3 + $0xc0] ss:$16 sps:$4 sm:$0xff]  }
  0x40   :  { %3444 = vmatprep.mubr.msk.f32.mxu1 %vm143_vm0, %v61_v62  ;;  %292 = vmatmul.mubr.f32.gmra.mrb[14].mxu0 %v58_v63  ;;  %v3970_v62 = vld [vmem:[%s5842_s3 + $0xec] ss:$16 sps:$4 sm:$0xff]   ;;  %v3976_v63 = vld [vmem:[%s5842_s3 + $0xe4] ss:$16 sps:$4 sm:$0xff]  }
  0x41   :  { %296 = vmatprep.mubr.f32.mxu0 %v63_v0  ;;  %817 = vmatprep.subr.bf16.mxu0 %v3967_v55  ;;  %v3968_v0 = vld [vmem:[%s5842_s3 + $0xe8] ss:$16 sps:$4 sm:$0xff]  }
  0x42   :  { %859 = vmatpush1.bf16.msra.mxu1 %v3950_v56  ;;  %818 = vmatpush1.bf16.msra.mxu0 %v3965_v57 }
  0x43   :  { %437 = vmatmul.mubr.f32.gmra.mrb[14].mxu1 %v60_v1  ;;  %860 = vmatprep.subr.bf16.mxu1 %v3961_v58  ;;  %v3974_v1 = vld [vmem:[%s5842_s3 + $0xe0] ss:$16 sps:$4 sm:$0xff]  }
  0x44   :  { %3445 = vmatprep.mubr.msk.f32.mxu1 %vm143_vm0, %v65_v3  ;;  %297 = vmatmul.mubr.f32.gmra.mrb[16].mxu0 %v62_v4  ;;  %v4920_v3 = vld [vmem:[%s5843_s4] sm:$0x77] }
  0x45   :  { %301 = vmatprep.mubr.f32.mxu0 %v67_v5  ;;  %819 = vmatprep.subr.bf16.mxu0 %v3973_v59  ;;  %v969_v4 = vcombine.high %v4920_v3, %v4920_v3  ;;  %v4391_v5 = vmov 0  }
  0x46   :  { %861 = vmatpush1.bf16.msra.mxu1 %v3959_v60  ;;  %820 = vmatpush1.bf16.msra.mxu0 %v3971_v61 }
  0x47   :  { %442 = vmatmul.mubr.f32.gmra.mrb[16].mxu1 %v64_v6  ;;  %862 = vmatprep.subr.bf16.mxu1 %v3970_v62 }
  0x48   :  { %3446 = vmatprep.mubr.msk.f32.mxu1 %vm143_vm0, %v69_v7  ;;  %302 = vmatmul.mubr.f32.gmra.mrb[18].mxu0 %v66_v8 }
  0x49   :  { %306 = vmatprep.mubr.f32.mxu0 %v71_v9  ;;  %821 = vmatprep.subr.bf16.mxu0 %v3976_v63 }
  0x4a   :  { %863 = vmatpush1.bf16.msra.mxu1 %v3968_v0  ;;  %822 = vmatpush1.bf16.msra.mxu0 %v3974_v1 }
  0x4b   :  { %447 = vmatmul.mubr.f32.gmra.mrb[18].mxu1 %v68_v10  ;;  %3485 = vmatprep.subr.msk.mxu1 %vm543_vm1, %v969_v4 }
  0x4c   :  { %3447 = vmatprep.mubr.msk.f32.mxu1 %vm143_vm0, %v73_v11  ;;  %307 = vmatmul.mubr.f32.gmra.mrb[20].mxu0 %v70_v12 }
  0x4d   :  { %311 = vmatprep.mubr.f32.mxu0 %v75_v14 }
  0x4f   :  { %452 = vmatmul.mubr.f32.gmra.mrb[20].mxu1 %v72_v15 }
  0x50   :  { %3448 = vmatprep.mubr.msk.f32.mxu1 %vm143_vm0, %v77_v2  ;;  %312 = vmatmul.mubr.f32.gmra.mrb[22].mxu0 %v74_v16 }
  0x51   :  { %316 = vmatprep.mubr.f32.mxu0 %v79_v17 }
  0x53   :  { %457 = vmatmul.mubr.f32.gmra.mrb[22].mxu1 %v76_v18 }
  0x54   :  { %3449 = vmatprep.mubr.msk.f32.mxu1 %vm143_vm0, %v81_v19  ;;  %317 = vmatmul.mubr.f32.gmra.mrb[24].mxu0 %v78_v20 }
  0x55   :  { %321 = vmatprep.mubr.f32.mxu0 %v83_v21 }
  0x57   :  { %462 = vmatmul.mubr.f32.gmra.mrb[24].mxu1 %v80_v22 }
  0x58   :  { %3450 = vmatprep.mubr.msk.f32.mxu1 %vm143_vm0, %v85_v23  ;;  %322 = vmatmul.mubr.f32.gmra.mrb[26].mxu0 %v82_v24 }
  0x59   :  { %326 = vmatprep.mubr.f32.mxu0 %v87_v25 }
  0x5b   :  { %467 = vmatmul.mubr.f32.gmra.mrb[26].mxu1 %v84_v26 }
  0x5c   :  { %3451 = vmatprep.mubr.msk.f32.mxu1 %vm143_vm0, %v89_v27  ;;  %327 = vmatmul.mubr.f32.gmra.mrb[28].mxu0 %v86_v28 }
  0x5d   :  { %331 = vmatprep.mubr.f32.mxu0 %v91_v29 }
  0x5f   :  { %472 = vmatmul.mubr.f32.gmra.mrb[28].mxu1 %v88_v30 }
  0x60   :  { %3452 = vmatprep.mubr.msk.f32.mxu1 %vm143_vm0, %v93_v31  ;;  %332 = vmatmul.mubr.f32.gmra.mrb[30].mxu0 %v90_v32 }
  0x61   :  { %839 = vmatprep.mubr.bf16.mxu0 %v4391_v5 }
  0x63   :  { %477 = vmatmul.mubr.f32.gmra.mrb[30].mxu1 %v92_v33 }
  0x64   :  { %880 = vmatprep.mubr.bf16.mxu1 %v4391_v5 }
  0xf7   :  { %v3782_v6 = vpop.f32.mrb[0].mxu0 }
  0xf8   :  { %v3783_v7 = vpop.f32.mrb[1].mxu0 }
  0xf9   :  { %v3784_v8 = vadd.f32 %v3783_v7, %v3782_v6 }
  0xfa   :  { %v403_v9 = vpop.f32.mrb[0].mxu1 }
  0xfb   :  { %v405_v10 = vpop.f32.mrb[1].mxu1  ;;  %v404_v11 = vadd.f32 %v3784_v8, %v403_v9  ;;  %v3785_v12 = vpop.f32.mrb[2].mxu0 }
  0xfc   :  { %v3786_v14 = vpop.f32.mrb[3].mxu0 }
  0xfd   :  { %v3787_v15 = vadd.f32 %v3786_v14, %v3785_v12  ;;  %v482_v20 = vmax.f32 %v404_v11, 0.0 }
  0xfe   :  { %v408_v2 = vpop.f32.mrb[2].mxu1 }
  0xff   :  { %v410_v16 = vpop.f32.mrb[3].mxu1  ;;  %v409_v17 = vadd.f32 %v3787_v15, %v408_v2  ;;  %v3788_v18 = vpop.f32.mrb[4].mxu0 }
 0x100   :  { %v3789_v19 = vpop.f32.mrb[5].mxu0 }
 0x101   :  { %v483_v21 = vmax.f32 %v409_v17, 0.0  ;;  %v3790_v22 = vadd.f32 %v3789_v19, %v3788_v18 }
 0x102   :  { %v413_v23 = vpop.f32.mrb[4].mxu1 }
 0x103   :  { %v415_v24 = vpop.f32.mrb[5].mxu1  ;;  %v498_v25 = vadd.f32 %v483_v21, %v482_v20  ;;  %v414_v26 = vadd.f32 %v3790_v22, %v413_v23  ;;  %v3791_v27 = vpop.f32.mrb[6].mxu0 }
 0x104   :  { %v3792_v28 = vpop.f32.mrb[7].mxu0 }
 0x105   :  { %v484_v29 = vmax.f32 %v414_v26, 0.0  ;;  %v3793_v30 = vadd.f32 %v3792_v28, %v3791_v27 }
 0x106   :  { %v418_v31 = vpop.f32.mrb[6].mxu1 }
 0x107   :  { %v420_v32 = vpop.f32.mrb[7].mxu1  ;;  %v499_v33 = vadd.f32 %v498_v25, %v484_v29  ;;  %v419_v34 = vadd.f32 %v3793_v30, %v418_v31  ;;  %v3794_v35 = vpop.f32.mrb[8].mxu0 }
 0x108   :  { %v3795_v36 = vpop.f32.mrb[9].mxu0 }
 0x109   :  { %v485_v37 = vmax.f32 %v419_v34, 0.0  ;;  %v3796_v38 = vadd.f32 %v3795_v36, %v3794_v35 }
 0x10a   :  { %v423_v39 = vpop.f32.mrb[8].mxu1 }
 0x10b   :  { %v425_v40 = vpop.f32.mrb[9].mxu1  ;;  %v500_v41 = vadd.f32 %v499_v33, %v485_v37  ;;  %v424_v42 = vadd.f32 %v3796_v38, %v423_v39  ;;  %v3797_v43 = vpop.f32.mrb[10].mxu0 }
 0x10c   :  { %v3798_v44 = vpop.f32.mrb[11].mxu0 }
 0x10d   :  { %v486_v45 = vmax.f32 %v424_v42, 0.0  ;;  %v3799_v46 = vadd.f32 %v3798_v44, %v3797_v43 }
 0x10e   :  { %v428_v47 = vpop.f32.mrb[10].mxu1 }
 0x10f   :  { %v430_v48 = vpop.f32.mrb[11].mxu1  ;;  %v501_v49 = vadd.f32 %v500_v41, %v486_v45  ;;  %v429_v50 = vadd.f32 %v3799_v46, %v428_v47  ;;  %v3800_v51 = vpop.f32.mrb[12].mxu0 }
 0x110   :  { %v3801_v52 = vpop.f32.mrb[13].mxu0 }
 0x111   :  { %v487_v53 = vmax.f32 %v429_v50, 0.0  ;;  %v3802_v54 = vadd.f32 %v3801_v52, %v3800_v51 }
 0x112   :  { %v433_v55 = vpop.f32.mrb[12].mxu1 }
 0x113   :  { %v435_v56 = vpop.f32.mrb[13].mxu1  ;;  %v502_v57 = vadd.f32 %v501_v49, %v487_v53  ;;  %v434_v58 = vadd.f32 %v3802_v54, %v433_v55  ;;  %v3803_v59 = vpop.f32.mrb[14].mxu0 }
 0x114   :  { %v3804_v60 = vpop.f32.mrb[15].mxu0 }
 0x115   :  { %v488_v61 = vmax.f32 %v434_v58, 0.0  ;;  %v3805_v62 = vadd.f32 %v3804_v60, %v3803_v59 }
 0x116   :  { %v438_v63 = vpop.f32.mrb[14].mxu1 }
 0x117   :  { %v440_v0 = vpop.f32.mrb[15].mxu1  ;;  %v503_v1 = vadd.f32 %v502_v57, %v488_v61  ;;  %v439_v4 = vadd.f32 %v3805_v62, %v438_v63  ;;  %v3806_v5 = vpop.f32.mrb[16].mxu0 }
 0x118   :  { %v3807_v6 = vpop.f32.mrb[17].mxu0 }
 0x119   :  { %v489_v7 = vmax.f32 %v439_v4, 0.0  ;;  %v3808_v8 = vadd.f32 %v3807_v6, %v3806_v5 }
 0x11a   :  { %v443_v9 = vpop.f32.mrb[16].mxu1 }
 0x11b   :  { %v445_v10 = vpop.f32.mrb[17].mxu1  ;;  %v504_v11 = vadd.f32 %v503_v1, %v489_v7  ;;  %v444_v12 = vadd.f32 %v3808_v8, %v443_v9  ;;  %v3809_v14 = vpop.f32.mrb[18].mxu0 }
 0x11c   :  { %v3810_v15 = vpop.f32.mrb[19].mxu0 }
 0x11d   :  { %v3811_v2 = vadd.f32 %v3810_v15, %v3809_v14  ;;  %v490_v21 = vmax.f32 %v444_v12, 0.0  ;;  %v505_v46 = vrot.slane %v504_v11, 4 }
 0x11e   :  { %v448_v16 = vpop.f32.mrb[18].mxu1 }
 0x11f   :  { %v450_v17 = vpop.f32.mrb[19].mxu1  ;;  %v449_v18 = vadd.f32 %v3811_v2, %v448_v16  ;;  %v3812_v19 = vpop.f32.mrb[20].mxu0  ;;  %v506_v55 = vadd.f32 %v505_v46, %v504_v11  ;;  %v3988_v46 = vld [vmem:[%s5844_s5 + $0x28] ss:$16 sps:$4 sm:$0xff]  }
 0x120   :  { %v3813_v20 = vpop.f32.mrb[21].mxu0 }
 0x121   :  { %v491_v22 = vmax.f32 %v449_v18, 0.0  ;;  %v3814_v23 = vadd.f32 %v3813_v20, %v3812_v19  ;;  %v507_v0 = vrot.slane %v506_v55, 2 }
 0x122   :  { %v453_v24 = vpop.f32.mrb[20].mxu1 }
 0x123   :  { %v455_v25 = vpop.f32.mrb[21].mxu1  ;;  %v511_v26 = vadd.f32 %v491_v22, %v490_v21  ;;  %v454_v27 = vadd.f32 %v3814_v23, %v453_v24  ;;  %v3815_v28 = vpop.f32.mrb[22].mxu0  ;;  %v508_v9 = vadd.f32 %v507_v0, %v506_v55  ;;  %v603_v24 = vlaneseq  ;;  %v4000_v55 = vld [vmem:[%s5844_s5 + $0x68] ss:$16 sps:$4 sm:$0xff]   ;;  %v4017_v0 = vld [vmem:[%s5844_s5 + $0xc4] ss:$16 sps:$4 sm:$0xff]  }
 0x124   :  { %v3816_v29 = vpop.f32.mrb[23].mxu0  ;;  %v552_v21 = vpop.xlane.xlu0 %551 }
 0x125   :  { %v492_v30 = vmax.f32 %v454_v27, 0.0  ;;  %v3817_v31 = vadd.f32 %v3816_v29, %v3815_v28  ;;  %v509_v14 = vrot.slane %v508_v9, 1  ;;  %v4925_v28 = vshrl.u32 %v603_v24, 7 }
 0x126   :  { %v458_v32 = vpop.f32.mrb[22].mxu1  ;;  %v4927_v29 = vand.u32 127, %v603_v24 }
 0x127   :  { %v460_v33 = vpop.f32.mrb[23].mxu1  ;;  %v512_v34 = vadd.f32 %v511_v26, %v492_v30  ;;  %v459_v35 = vadd.f32 %v3817_v31, %v458_v32  ;;  %v3818_v36 = vpop.f32.mrb[24].mxu0  ;;  %v510_v2 = vadd.f32 %v509_v14, %v508_v9  ;;  %v917_v30 = vld [vmem:[%s5843_s4 + $0x8] sm:$0x77]  ;;  %v565_v14 = vld [vmem:[%s5845_s7] sm:$0xff] }
 0x128   :  { %v3819_v37 = vpop.f32.mrb[25].mxu0  ;;  %v561_v31 = vpop.xlane.xlu0 %560  ;;  %v4024_v9 = vld [vmem:[%s5844_s5 + $0xe8] ss:$16 sps:$4 sm:$0xff]  }
 0x129   :  { %v493_v38 = vmax.f32 %v459_v35, 0.0  ;;  %v3820_v39 = vadd.f32 %v3819_v37, %v3818_v36  ;;  %v525_v18 = vmul.f32 0.015625, %v510_v2  ;;  %v960_v35 = vsub.s32 %v4927_v29, %v4925_v28 }
 0x12a   :  { %v463_v40 = vpop.f32.mrb[24].mxu1  ;;  %v563_v36 = vmul.f32 0.001953125, %v552_v21  ;;  %v564_v37 = vmul.f32 0.001953125, %v561_v31  ;;  %v920_v2 = vsub.s32 1, %v4925_v28 }
 0x12b   :  { %v465_v41 = vpop.f32.mrb[25].mxu1  ;;  %v513_v42 = vadd.f32 %v512_v34, %v493_v38  ;;  %v464_v43 = vadd.f32 %v3820_v39, %v463_v40  ;;  %v3821_v44 = vpop.f32.mrb[26].mxu0  ;;  %v567_v22 = vpack.c.bf16 %v525_v18, %v525_v18  ;;  %v970_v34 = vcombine.high %v917_v30, %v917_v30  ;;  %v566_v18 = vld [vmem:[%s5845_s7 + $0x8] sm:$0xff] }
 0x12c   :  { %v3822_v45 = vpop.f32.mrb[27].mxu0  ;;  %v961_v38 = vrot.slane %v563_v36, %v960_v35  ;;  %v965_v39 = vrot.slane %v564_v37, %v960_v35  ;;  %v3979_v41 = vld [vmem:[%s5844_s5] ss:$16 sps:$4 sm:$0xff]   ;;  %v921_v24 = vrot.slane %v565_v14, %v920_v2  ;;  %v929_v36 = vrot.slane %v566_v18, %v920_v2 }
 0x12d   :  { %v494_v47 = vmax.f32 %v464_v43, 0.0  ;;  %v3823_v48 = vadd.f32 %v3822_v45, %v3821_v44  ;;  %v641_v26 = vunpack.c.l.b16 %v567_v22  ;;  %v3984_v43 = vld [vmem:[%s5844_s5 + $0xc] ss:$16 sps:$4 sm:$0xff]   ;;  %v3985_v44 = vld [vmem:[%s5844_s5 + $0x20] ss:$16 sps:$4 sm:$0xff]  }
 0x12e   :  { %v468_v49 = vpop.f32.mrb[26].mxu1  ;;  %v966_v40 = vsel %vm643_vm2, %v965_v39, %v961_v38  ;;  %v3987_v45 = vld [vmem:[%s5844_s5 + $0x24] ss:$16 sps:$4 sm:$0xff]   ;;  %v941_v35 = vrot.slane %v921_v24, %v920_v2  ;;  %v4042_v24 = vld [vmem:[%s5844_s5 + $0x148] ss:$16 sps:$4 sm:$0xff]  }
 0x12f   :  { %v470_v50 = vpop.f32.mrb[27].mxu1  ;;  %v514_v51 = vadd.f32 %v513_v42, %v494_v47  ;;  %v469_v52 = vadd.f32 %v3823_v48, %v468_v49  ;;  %v3824_v53 = vpop.f32.mrb[28].mxu0  ;;  %v3982_v42 = vld [vmem:[%s5844_s5 + $0x8] ss:$16 sps:$4 sm:$0xff]   ;;  %v3990_v47 = vld [vmem:[%s5844_s5 + $0x2c] ss:$16 sps:$4 sm:$0xff]  }
 0x130   :  { %v3825_v54 = vpop.f32.mrb[29].mxu0  ;;  %v3993_v48 = vld [vmem:[%s5844_s5 + $0x44] ss:$16 sps:$4 sm:$0xff]   ;;  %v3991_v49 = vld [vmem:[%s5844_s5 + $0x40] ss:$16 sps:$4 sm:$0xff]  }
 0x131   :  { %v495_v56 = vmax.f32 %v469_v52, 0.0  ;;  %v3826_v57 = vadd.f32 %v3825_v54, %v3824_v53  ;;  %v3996_v50 = vld [vmem:[%s5844_s5 + $0x4c] ss:$16 sps:$4 sm:$0xff]   ;;  %v3999_v52 = vld [vmem:[%s5844_s5 + $0x64] ss:$16 sps:$4 sm:$0xff]  }
 0x132   :  { %v473_v58 = vpop.f32.mrb[28].mxu1  ;;  %v4002_v53 = vld [vmem:[%s5844_s5 + $0x6c] ss:$16 sps:$4 sm:$0xff]   ;;  %v3997_v54 = vld [vmem:[%s5844_s5 + $0x60] ss:$16 sps:$4 sm:$0xff]  }
 0x133   :  { %v475_v59 = vpop.f32.mrb[29].mxu1  ;;  %v515_v60 = vadd.f32 %v514_v51, %v495_v56  ;;  %v474_v61 = vadd.f32 %v3826_v57, %v473_v58  ;;  %v3827_v62 = vpop.f32.mrb[30].mxu0  ;;  %v3994_v51 = vld [vmem:[%s5844_s5 + $0x48] ss:$16 sps:$4 sm:$0xff]   ;;  %v4005_v56 = vld [vmem:[%s5844_s5 + $0x84] ss:$16 sps:$4 sm:$0xff]  }
 0x134   :  { %v3828_v63 = vpop.f32.mrb[31].mxu0  ;;  %v4008_v57 = vld [vmem:[%s5844_s5 + $0x8c] ss:$16 sps:$4 sm:$0xff]   ;;  %v4003_v58 = vld [vmem:[%s5844_s5 + $0x80] ss:$16 sps:$4 sm:$0xff]  }
 0x135   :  { %v496_v1 = vmax.f32 %v474_v61, 0.0  ;;  %v3829_v4 = vadd.f32 %v3828_v63, %v3827_v62  ;;  %v4006_v59 = vld [vmem:[%s5844_s5 + $0x88] ss:$16 sps:$4 sm:$0xff]   ;;  %v4014_v61 = vld [vmem:[%s5844_s5 + $0xac] ss:$16 sps:$4 sm:$0xff]  }
 0x136   :  { %v478_v5 = vpop.f32.mrb[30].mxu1  ;;  %v4009_v62 = vld [vmem:[%s5844_s5 + $0xa0] ss:$16 sps:$4 sm:$0xff]   ;;  %v4012_v63 = vld [vmem:[%s5844_s5 + $0xa8] ss:$16 sps:$4 sm:$0xff]  }
 0x137   :  { %v480_v6 = vpop.f32.mrb[31].mxu1  ;;  %v516_v7 = vadd.f32 %v515_v60, %v496_v1  ;;  %v479_v8 = vadd.f32 %v3829_v4, %v478_v5  ;;  %v4011_v60 = vld [vmem:[%s5844_s5 + $0xa4] ss:$16 sps:$4 sm:$0xff]   ;;  %v4020_v1 = vld [vmem:[%s5844_s5 + $0xcc] ss:$16 sps:$4 sm:$0xff]  }
 0x138   :  { %v4015_v4 = vld [vmem:[%s5844_s5 + $0xc0] ss:$16 sps:$4 sm:$0xff]   ;;  %v4018_v5 = vld [vmem:[%s5844_s5 + $0xc8] ss:$16 sps:$4 sm:$0xff]   ;;  %v4023_v6 = vld [vmem:[%s5844_s5 + $0xe4] ss:$16 sps:$4 sm:$0xff]  }
 0x139   :  { %v497_v10 = vmax.f32 %v479_v8, 0.0  ;;  %v4021_v8 = vld [vmem:[%s5844_s5 + $0xe0] ss:$16 sps:$4 sm:$0xff]  }
 0x13b   :  { %v517_v12 = vadd.f32 %v516_v7, %v497_v10  ;;  %v4026_v7 = vld [vmem:[%s5844_s5 + $0xec] ss:$16 sps:$4 sm:$0xff]   ;;  %v605_v10 = vsub.s32 0, %v4925_v28 }
 0x13d   :  { %v518_v11 = vrot.slane %v517_v12, 4 }
 0x13f   :  { %v519_v15 = vadd.f32 %v518_v11, %v517_v12  ;;  %v609_v12 = vsub.s32 4, %v4925_v28  ;;  %v606_v11 = vrot.slane %v565_v14, %v605_v10 }
 0x141   :  { %v520_v16 = vrot.slane %v519_v15, 2 }
 0x143   :  { %v521_v17 = vadd.f32 %v520_v16, %v519_v15  ;;  %v610_v15 = vrot.slane %v565_v14, %v609_v12  ;;  %v924_v16 = vsub.s32 5, %v4925_v28 }
 0x145   :  { %v522_v19 = vrot.slane %v521_v17, 1  ;;  %v630_v21 = vrot.slane %v610_v15, %v605_v10  ;;  %v933_v38 = vrot.slane %v566_v18, %v924_v16  ;;  %v4032_v15 = vld [vmem:[%s5844_s5 + $0x10c] ss:$16 sps:$4 sm:$0xff]  }
 0x147   :  { %v523_v20 = vadd.f32 %v522_v19, %v521_v17 }
 0x149   :  { %v526_v23 = vmul.f32 0.015625, %v523_v20  ;;  %v626_v20 = vrot.slane %v606_v11, %v605_v10  ;;  %v4029_v11 = vld [vmem:[%s5844_s5 + $0x104] ss:$16 sps:$4 sm:$0xff]  }
 0x14b   :  { %v568_v25 = vpack.c.bf16 %v526_v23, %v526_v23 }
 0x14d   :  { %v642_v27 = vunpack.c.l.b16 %v568_v25 }
 0x14f   :  { %v644_v32 = vsel %vm643_vm2, %v642_v27, %v641_v26  ;;  %v925_v27 = vrot.slane %v565_v14, %v924_v16  ;;  %v4030_v16 = vld [vmem:[%s5844_s5 + $0x108] ss:$16 sps:$4 sm:$0xff]   ;;  %vm3288_vm2 = vcmp.eq.s32.totalorder %v4925_v28, %v4927_v29 }
 0x150   :  { %v645_v33 = vpack.c.b16 %v644_v32, %v644_v32 }
 0x151   :  { %v945_v37 = vrot.slane %v925_v27, %v920_v2  ;;  %v4045_v27 = vld [vmem:[%s5844_s5 + $0x160] ss:$16 sps:$4 sm:$0xff]  }
 0x152   :  { %840 = vmatmul.mubr.bf16.vlgmr.msra.gmra.mrb[32].mxu0 %v645_v33  ;;  %881 = vmatmul.mubr.bf16.vlgmr.msra.gmra.mrb[32].mxu1 %v645_v33 }
 0x153   :  { %3486 = vmatpush1.msk.msra.mxu1 %vm543_vm1, %v4920_v3  ;;  %1046 = vmatprep.mubr.f32.mxu1 %v4390_v13  ;;  %v3981_v3 = vld [vmem:[%s5844_s5 + $0x4] ss:$16 sps:$4 sm:$0xff]  }
 0x154   :  { %3488 = vmatprep.subr.msk.mxu1 %vm543_vm1, %v970_v34  ;;  %1958 = vmatprep.subr.bf16.mxu0 %v3981_v3 }
 0x155   :  { %1959 = vmatpush1.bf16.msra.mxu0 %v3979_v41 }
 0x156   :  { %1960 = vmatprep.subr.bf16.mxu0 %v3987_v45  ;;  %v949_v45 = vrot.slane %v929_v36, %v920_v2  ;;  %v4054_v36 = vld [vmem:[%s5844_s5 + $0x188] ss:$16 sps:$4 sm:$0xff]  }
 0x159   :  { %1961 = vmatpush1.bf16.msra.mxu0 %v3985_v44 }
 0x15a   :  { %3487 = vmatmul.mubr.msk.f32.vlgmr.msra.gmra.mrb[36].mxu1 %vm971_vm3, %v966_v40  ;;  %1962 = vmatprep.subr.bf16.mxu0 %v3993_v48 }
 0x15b   :  { %3489 = vmatpush1.msk.msra.mxu1 %vm543_vm1, %v917_v30  ;;  %1117 = vmatprep.mubr.f32.mxu1 %v4390_v13  ;;  %v614_v30 = vrot.slane %v566_v18, %v605_v10 }
 0x15c   :  { %2040 = vmatprep.subr.bf16.mxu1 %v3984_v43 }
 0x15d   :  { %1963 = vmatpush1.bf16.msra.mxu0 %v3991_v49  ;;  %v634_v39 = vrot.slane %v614_v30, %v605_v10  ;;  %v4048_v30 = vld [vmem:[%s5844_s5 + $0x168] ss:$16 sps:$4 sm:$0xff]  }
 0x15e   :  { %3490 = vmatmul.mubr.msk.f32.vlgmr.msra.gmra.mrb[38].mxu1 %vm971_vm3, %v966_v40  ;;  %1964 = vmatprep.subr.bf16.mxu0 %v3999_v52  ;;  %v618_v40 = vrot.slane %v566_v18, %v609_v12  ;;  %v4038_v18 = vld [vmem:[%s5844_s5 + $0x12c] ss:$16 sps:$4 sm:$0xff]  }
 0x15f   :  { %2041 = vmatpush1.bf16.msra.mxu1 %v3982_v42 }
 0x160   :  { %2042 = vmatprep.subr.bf16.mxu1 %v3990_v47  ;;  %v953_v47 = vrot.slane %v933_v38, %v920_v2  ;;  %v638_v49 = vrot.slane %v618_v40, %v605_v10  ;;  %v4027_v2 = vld [vmem:[%s5844_s5 + $0x100] ss:$16 sps:$4 sm:$0xff]   ;;  %v4062_v38 = vld [vmem:[%s5844_s5 + $0x1ac] ss:$16 sps:$4 sm:$0xff]   ;;  %v4060_v40 = vld [vmem:[%s5844_s5 + $0x1a8] ss:$16 sps:$4 sm:$0xff]  }
 0x161   :  { %1965 = vmatpush1.bf16.msra.mxu0 %v3997_v54 }
 0x162   :  { %1966 = vmatprep.subr.bf16.mxu0 %v4005_v56 }
 0x163   :  { %2043 = vmatpush1.bf16.msra.mxu1 %v3988_v46 }
 0x164   :  { %2044 = vmatprep.subr.bf16.mxu1 %v3996_v50 }
 0x165   :  { %1967 = vmatpush1.bf16.msra.mxu0 %v4003_v58 }
 0x166   :  { %1968 = vmatprep.subr.bf16.mxu0 %v4011_v60 }
 0x167   :  { %2045 = vmatpush1.bf16.msra.mxu1 %v3994_v51 }
 0x168   :  { %2046 = vmatprep.subr.bf16.mxu1 %v4002_v53 }
 0x169   :  { %1969 = vmatpush1.bf16.msra.mxu0 %v4009_v62 }
 0x16a   :  { %1970 = vmatprep.subr.bf16.mxu0 %v4017_v0 }
 0x16b   :  { %2047 = vmatpush1.bf16.msra.mxu1 %v4000_v55 }
 0x16c   :  { %2048 = vmatprep.subr.bf16.mxu1 %v4008_v57 }
 0x16d   :  { %1971 = vmatpush1.bf16.msra.mxu0 %v4015_v4 }
 0x16e   :  { %1972 = vmatprep.subr.bf16.mxu0 %v4023_v6 }
 0x16f   :  { %2049 = vmatpush1.bf16.msra.mxu1 %v4006_v59 }
 0x170   :  { %2050 = vmatprep.subr.bf16.mxu1 %v4014_v61 }
 0x171   :  { %1973 = vmatpush1.bf16.msra.mxu0 %v4021_v8 }
 0x172   :  { %1974 = vmatprep.subr.bf16.mxu0 %v4029_v11  ;;  %v4087_v11 = vld [vmem:[%s5844_s5 + $0x240] ss:$16 sps:$4 sm:$0xff]  }
 0x173   :  { %2051 = vmatpush1.bf16.msra.mxu1 %v4012_v63 }
 0x174   :  { %2052 = vmatprep.subr.bf16.mxu1 %v4020_v1 }
 0x175   :  { %1975 = vmatpush1.bf16.msra.mxu0 %v4027_v2  ;;  %v4095_v2 = vld [vmem:[%s5844_s5 + $0x264] ss:$16 sps:$4 sm:$0xff]  }
 0x177   :  { %2053 = vmatpush1.bf16.msra.mxu1 %v4018_v5 }
 0x178   :  { %2054 = vmatprep.subr.bf16.mxu1 %v4026_v7 }
 0x17b   :  { %2055 = vmatpush1.bf16.msra.mxu1 %v4024_v9 }
 0x17c   :  { %2056 = vmatprep.subr.bf16.mxu1 %v4032_v15  ;;  %v4090_v15 = vld [vmem:[%s5844_s5 + $0x248] ss:$16 sps:$4 sm:$0xff]  }
 0x17f   :  { %2057 = vmatpush1.bf16.msra.mxu1 %v4030_v16  ;;  %v4098_v16 = vld [vmem:[%s5844_s5 + $0x26c] ss:$16 sps:$4 sm:$0xff]  }
 0x180   :  { %2058 = vmatprep.subr.bf16.mxu1 %v4038_v18  ;;  %v4096_v18 = vld [vmem:[%s5844_s5 + $0x268] ss:$16 sps:$4 sm:$0xff]  }
 0x225   :  { %v841_v17 = vpop.f32.mrb[32].mxu0  ;;  %v882_v19 = vpop.f32.mrb[32].mxu1 }
 0x226   :  { %v843_v22 = vpop.f32.mrb[33].mxu0  ;;  %v884_v23 = vpop.f32.mrb[33].mxu1  ;;  %v5048_v33 = vadd.f32 %v841_v17, %v626_v20  ;;  %v5060_v48 = vadd.f32 %v882_v19, %v634_v39  ;;  %v4035_v17 = vld [vmem:[%s5844_s5 + $0x124] ss:$16 sps:$4 sm:$0xff]   ;;  %v4033_v19 = vld [vmem:[%s5844_s5 + $0x120] ss:$16 sps:$4 sm:$0xff]  }
 0x227   :  { %v845_v25 = vpop.f32.mrb[34].mxu0  ;;  %v886_v26 = vpop.f32.mrb[34].mxu1  ;;  %v5050_v34 = vadd.f32 %v843_v22, %v630_v21  ;;  %v5076_v61 = vadd.f32 %v884_v23, %v638_v49  ;;  %v4036_v20 = vld [vmem:[%s5844_s5 + $0x128] ss:$16 sps:$4 sm:$0xff]   ;;  %1976 = vmatprep.subr.bf16.mxu0 %v4035_v17  ;;  %v4041_v21 = vld [vmem:[%s5844_s5 + $0x144] ss:$16 sps:$4 sm:$0xff]  }
 0x228   :  { %v846_v31 = vpop.f32.mrb[35].mxu0  ;;  %v887_v32 = vpop.f32.mrb[35].mxu1  ;;  %v889_v3 = vmul.f32 %v5048_v33, %v5048_v33  ;;  %v891_v60 = vmul.f32 %v5060_v48, %v5060_v48  ;;  %1977 = vmatpush1.bf16.msra.mxu0 %v4033_v19  ;;  %2059 = vmatpush1.bf16.msra.mxu1 %v4036_v20  ;;  %v4044_v22 = vld [vmem:[%s5844_s5 + $0x14c] ss:$16 sps:$4 sm:$0xff]   ;;  %v4039_v23 = vld [vmem:[%s5844_s5 + $0x140] ss:$16 sps:$4 sm:$0xff]  }
 0x229   :  { %v890_v42 = vmul.f32 %v5050_v34, %v5050_v34  ;;  %v892_v7 = vmul.f32 %v5076_v61, %v5076_v61  ;;  %1978 = vmatprep.subr.bf16.mxu0 %v4041_v21  ;;  %2060 = vmatprep.subr.bf16.mxu1 %v4044_v22  ;;  %v4047_v25 = vld [vmem:[%s5844_s5 + $0x164] ss:$16 sps:$4 sm:$0xff]   ;;  %v4050_v26 = vld [vmem:[%s5844_s5 + $0x16c] ss:$16 sps:$4 sm:$0xff]   ;;  %v4057_v39 = vld [vmem:[%s5844_s5 + $0x1a0] ss:$16 sps:$4 sm:$0xff]  }
 0x22a   :  { %v894_v53 = vsel %vm893_vm4, %v889_v3, 0.0  ;;  %v897_v8 = vsel %vm893_vm4, %v891_v60, 0.0  ;;  %v4053_v31 = vld [vmem:[%s5844_s5 + $0x184] ss:$16 sps:$4 sm:$0xff]   ;;  %v4056_v32 = vld [vmem:[%s5844_s5 + $0x18c] ss:$16 sps:$4 sm:$0xff]  }
 0x22b   :  { %v895_v54 = vsel %vm893_vm4, %v890_v42, 0.0  ;;  %v899_v12 = vsel %vm893_vm4, %v892_v7, 0.0  ;;  %v4065_v3 = vld [vmem:[%s5844_s5 + $0x1c4] ss:$16 sps:$4 sm:$0xff]   ;;  %v4066_v42 = vld [vmem:[%s5844_s5 + $0x1c8] ss:$16 sps:$4 sm:$0xff]  }
 0x22c   :  { %v896_v1 = vadd.f32 %v895_v54, %v894_v53  ;;  %1979 = vmatpush1.bf16.msra.mxu0 %v4039_v23  ;;  %2061 = vmatpush1.bf16.msra.mxu1 %v4042_v24  ;;  %v4069_v49 = vld [vmem:[%s5844_s5 + $0x1e0] ss:$16 sps:$4 sm:$0xff]   ;;  %v4101_v19 = vld [vmem:[%s5844_s5 + $0x284] ss:$16 sps:$4 sm:$0xff]   ;;  %v4104_v20 = vld [vmem:[%s5844_s5 + $0x28c] ss:$16 sps:$4 sm:$0xff]  }
 0x22d   :  { %v1048_v41 = vpop.f32.mrb[36].mxu1  ;;  %1980 = vmatprep.subr.bf16.mxu0 %v4047_v25  ;;  %2062 = vmatprep.subr.bf16.mxu1 %v4050_v26  ;;  %v4093_v17 = vld [vmem:[%s5844_s5 + $0x260] ss:$16 sps:$4 sm:$0xff]   ;;  %v4102_v22 = vld [vmem:[%s5844_s5 + $0x288] ss:$16 sps:$4 sm:$0xff]  }
 0x22e   :  { %v5056_v43 = vadd.f32 %v1048_v41, %v941_v35  ;;  %v1050_v44 = vpop.f32.mrb[37].mxu1  ;;  %v898_v10 = vadd.f32 %v897_v8, %v896_v1  ;;  %v4051_v35 = vld [vmem:[%s5844_s5 + $0x180] ss:$16 sps:$4 sm:$0xff]   ;;  %v4107_v23 = vld [vmem:[%s5844_s5 + $0x2a4] ss:$16 sps:$4 sm:$0xff]  }
 0x22f   :  { %v5058_v46 = vadd.f32 %v1050_v44, %v945_v37  ;;  %v4059_v37 = vld [vmem:[%s5844_s5 + $0x1a4] ss:$16 sps:$4 sm:$0xff]   ;;  %v4063_v41 = vld [vmem:[%s5844_s5 + $0x1c0] ss:$16 sps:$4 sm:$0xff]   ;;  %v4068_v44 = vld [vmem:[%s5844_s5 + $0x1cc] ss:$16 sps:$4 sm:$0xff]  }
 0x230   :  { %v1124_v50 = vmul.f32 %v5056_v43, %v5056_v43  ;;  %v900_v14 = vadd.f32 %v899_v12, %v898_v10  ;;  %1981 = vmatpush1.bf16.msra.mxu0 %v4045_v27  ;;  %2063 = vmatpush1.bf16.msra.mxu1 %v4048_v30  ;;  %v4075_v1 = vld [vmem:[%s5844_s5 + $0x200] ss:$16 sps:$4 sm:$0xff]   ;;  %v4089_v12 = vld [vmem:[%s5844_s5 + $0x244] ss:$16 sps:$4 sm:$0xff]   ;;  %v4110_v24 = vld [vmem:[%s5844_s5 + $0x2ac] ss:$16 sps:$4 sm:$0xff]  }
 0x231   :  { %v1125_v51 = vmul.f32 %v5058_v46, %v5058_v46  ;;  %v1119_v52 = vpop.f32.mrb[38].mxu1  ;;  %1982 = vmatprep.subr.bf16.mxu0 %v4053_v31  ;;  %2064 = vmatprep.subr.bf16.mxu1 %v4056_v32  ;;  %v4099_v21 = vld [vmem:[%s5844_s5 + $0x280] ss:$16 sps:$4 sm:$0xff]   ;;  %v4108_v27 = vld [vmem:[%s5844_s5 + $0x2a8] ss:$16 sps:$4 sm:$0xff]  }
 0x232   :  { %v1128_v55 = vsel %vm893_vm4, %v1124_v50, 0.0  ;;  %v5069_v56 = vadd.f32 %v1119_v52, %v949_v45  ;;  %v1121_v57 = vpop.f32.mrb[39].mxu1  ;;  %v4071_v45 = vld [vmem:[%s5844_s5 + $0x1e4] ss:$16 sps:$4 sm:$0xff]   ;;  %v4072_v50 = vld [vmem:[%s5844_s5 + $0x1e8] ss:$16 sps:$4 sm:$0xff]  }
 0x233   :  { %v1129_v58 = vsel %vm893_vm4, %v1125_v51, 0.0  ;;  %v5072_v59 = vadd.f32 %v1121_v57, %v953_v47  ;;  %v4074_v47 = vld [vmem:[%s5844_s5 + $0x1ec] ss:$16 sps:$4 sm:$0xff]   ;;  %v4077_v51 = vld [vmem:[%s5844_s5 + $0x204] ss:$16 sps:$4 sm:$0xff]  }
 0x234   :  { %v1126_v62 = vmul.f32 %v5069_v56, %v5069_v56  ;;  %v1130_v63 = vadd.f32 %v1129_v58, %v1128_v55  ;;  %1983 = vmatpush1.bf16.msra.mxu0 %v4051_v35  ;;  %2065 = vmatpush1.bf16.msra.mxu1 %v4054_v36  ;;  %v4080_v52 = vld [vmem:[%s5844_s5 + $0x20c] ss:$16 sps:$4 sm:$0xff]   ;;  %v4105_v26 = vld [vmem:[%s5844_s5 + $0x2a0] ss:$16 sps:$4 sm:$0xff]   ;;  %v4113_v30 = vld [vmem:[%s5844_s5 + $0x2c4] ss:$16 sps:$4 sm:$0xff]  }
 0x235   :  { %v1127_v0 = vmul.f32 %v5072_v59, %v5072_v59  ;;  %1984 = vmatprep.subr.bf16.mxu0 %v4059_v37  ;;  %2066 = vmatprep.subr.bf16.mxu1 %v4062_v38  ;;  %v4116_v31 = vld [vmem:[%s5844_s5 + $0x2cc] ss:$16 sps:$4 sm:$0xff]   ;;  %v4111_v32 = vld [vmem:[%s5844_s5 + $0x2c0] ss:$16 sps:$4 sm:$0xff]   ;;  %v4114_v35 = vld [vmem:[%s5844_s5 + $0x2c8] ss:$16 sps:$4 sm:$0xff]  }
 0x236   :  { %v1131_v4 = vsel %vm893_vm4, %v1126_v62, 0.0  ;;  %v4119_v36 = vld [vmem:[%s5844_s5 + $0x2e4] ss:$16 sps:$4 sm:$0xff]   ;;  %v4122_v37 = vld [vmem:[%s5844_s5 + $0x2ec] ss:$16 sps:$4 sm:$0xff]  }
 0x237   :  { %v1132_v5 = vadd.f32 %v1131_v4, %v1130_v63  ;;  %v1133_v6 = vsel %vm893_vm4, %v1127_v0, 0.0  ;;  %v4078_v4 = vld [vmem:[%s5844_s5 + $0x208] ss:$16 sps:$4 sm:$0xff]   ;;  %v4117_v38 = vld [vmem:[%s5844_s5 + $0x2e0] ss:$16 sps:$4 sm:$0xff]  }
 0x238   :  { %1985 = vmatpush1.bf16.msra.mxu0 %v4057_v39  ;;  %2067 = vmatpush1.bf16.msra.mxu1 %v4060_v40  ;;  %v4120_v39 = vld [vmem:[%s5844_s5 + $0x2e8] ss:$16 sps:$4 sm:$0xff]   ;;  %v4125_v40 = vld [vmem:[%s5844_s5 + $0x304] ss:$16 sps:$4 sm:$0xff]  }
 0x239   :  { %v1134_v9 = vadd.f32 %v1133_v6, %v1132_v5  ;;  %1986 = vmatprep.subr.bf16.mxu0 %v4065_v3  ;;  %2068 = vmatprep.subr.bf16.mxu1 %v4068_v44  ;;  %v4126_v44 = vld [vmem:[%s5844_s5 + $0x308] ss:$16 sps:$4 sm:$0xff]  }
 0x23b   :  { %1135 = vadd.xlane.f32.xlu1 %v1134_v9  ;;  %v4086_v9 = vld [vmem:[%s5844_s5 + $0x22c] ss:$16 sps:$4 sm:$0xff]  }
 0x23c   :  { %1987 = vmatpush1.bf16.msra.mxu0 %v4063_v41  ;;  %2069 = vmatpush1.bf16.msra.mxu1 %v4066_v42  ;;  %v4128_v41 = vld [vmem:[%s5844_s5 + $0x30c] ss:$16 sps:$4 sm:$0xff]   ;;  %v4123_v42 = vld [vmem:[%s5844_s5 + $0x300] ss:$16 sps:$4 sm:$0xff]  }
 0x23d   :  { %1988 = vmatprep.subr.bf16.mxu0 %v4071_v45  ;;  %2070 = vmatprep.subr.bf16.mxu1 %v4074_v47  ;;  %v4131_v45 = vld [vmem:[%s5844_s5 + $0x324] ss:$16 sps:$4 sm:$0xff]   ;;  %v4134_v47 = vld [vmem:[%s5844_s5 + $0x32c] ss:$16 sps:$4 sm:$0xff]  }
 0x23f   :  { %901 = vadd.xlane.f32.xlu1 %v900_v14  ;;  %v4092_v14 = vld [vmem:[%s5844_s5 + $0x24c] ss:$16 sps:$4 sm:$0xff]  }
 0x240   :  { %1989 = vmatpush1.bf16.msra.mxu0 %v4069_v49  ;;  %2071 = vmatpush1.bf16.msra.mxu1 %v4072_v50  ;;  %v4129_v50 = vld [vmem:[%s5844_s5 + $0x320] ss:$16 sps:$4 sm:$0xff]  }
 0x241   :  { %1999 = vmatprep.subr.bf16.mxu0 %v4077_v51  ;;  %2081 = vmatprep.subr.bf16.mxu1 %v4080_v52  ;;  %v4132_v51 = vld [vmem:[%s5844_s5 + $0x328] ss:$16 sps:$4 sm:$0xff]   ;;  %v4137_v52 = vld [vmem:[%s5844_s5 + $0x344] ss:$16 sps:$4 sm:$0xff]  }
 0x2c8   :  { %v1136_v53 = vpop.xlane.xlu1 %1135 }
 0x2c9   :  { %4363 = vrsqrt.f32 %v1136_v53  ;;  %vm1139_vm5 = vcmp.eq.f32.partialorder %v1136_v53, inf  ;;  %v1142_v57 = vand.u32 2147483648, %v1136_v53  ;;  %vm1141_vm6 = vcmp.eq.f32.partialorder %v1136_v53, 0.0 }
 0x2cc   :  { %v902_v25 = vpop.xlane.xlu1 %901 }
 0x2cd   :  { %vm905_vm7 = vcmp.eq.f32.partialorder %v902_v25, inf  ;;  %vm907_vm8 = vcmp.eq.f32.partialorder %v902_v25, 0.0 }
 0x2d3   :  { %v4364_v54 = vpop.eup %4363 }
 0x2d4   :  { %v1138_v55 = vmul.f32 %v4364_v54, %v1136_v53 }
 0x2d6   :  { %v1140_v58 = vsel %vm1139_vm5, %v1136_v53, %v1138_v55  ;;  %v4140_v53 = vld [vmem:[%s5844_s5 + $0x34c] ss:$16 sps:$4 sm:$0xff]   ;;  %v908_v55 = vand.u32 2147483648, %v902_v25  ;;  %vm3345_vm5 = vcmask 8192  }
 0x2d7   :  { %v1143_v60 = vsel %vm1141_vm6, %v1142_v57, %v1140_v58  ;;  %v4135_v57 = vld [vmem:[%s5844_s5 + $0x340] ss:$16 sps:$4 sm:$0xff]   ;;  %v4138_v58 = vld [vmem:[%s5844_s5 + $0x348] ss:$16 sps:$4 sm:$0xff]  }
 0x2d8   :  { %v1144_v62 = vmax.f32 %v1143_v60, 1e-06  ;;  %v4143_v60 = vld [vmem:[%s5844_s5 + $0x364] ss:$16 sps:$4 sm:$0xff]  }
 0x2da   :  { %4365 = vrcp.f32 %v1144_v62  ;;  %v4146_v62 = vld [vmem:[%s5844_s5 + $0x36c] ss:$16 sps:$4 sm:$0xff]  }
 0x2db   :  { %4367 = vrsqrt.f32 %v902_v25 }
 0x2e4   :  { %v5190_v63 = vpop.eup %4365 }
 0x2e5   :  { %v1147_v0 = vmul.f32 %v5190_v63, %v5058_v46  ;;  %v1146_v5 = vmul.f32 %v5190_v63, %v5056_v43  ;;  %v1149_v6 = vmul.f32 %v5190_v63, %v5072_v59  ;;  %v4083_v46 = vld [vmem:[%s5844_s5 + $0x224] ss:$16 sps:$4 sm:$0xff]   ;;  %v4081_v43 = vld [vmem:[%s5844_s5 + $0x220] ss:$16 sps:$4 sm:$0xff]   ;;  %v4084_v59 = vld [vmem:[%s5844_s5 + $0x228] ss:$16 sps:$4 sm:$0xff]   ;;  %v4368_v3 = vpop.eup %4367 }
 0x2e6   :  { %v904_v49 = vmul.f32 %v4368_v3, %v902_v25  ;;  %v4200_v3 = vld [vmem:[%s5846_s6 + $0x8c] ss:$16 sps:$4 sm:$0xff]  }
 0x2e7   :  { %v1151_v7 = vpack.c.bf16 %v1147_v0, %v1147_v0  ;;  %v1150_v8 = vpack.c.bf16 %v1146_v5, %v1146_v5  ;;  %v1153_v10 = vpack.c.bf16 %v1149_v6, %v1149_v6  ;;  %v4149_v6 = vld [vmem:[%s5844_s5 + $0x384] ss:$16 sps:$4 sm:$0xff]  }
 0x2e8   :  { %v906_v54 = vsel %vm905_vm7, %v902_v25, %v904_v49  ;;  %v4201_v49 = vld [vmem:[%s5846_s6 + $0xa0] ss:$16 sps:$4 sm:$0xff]   ;;  %vm3334_vm7 = vcmask 1024  }
 0x2e9   :  { %1990 = vmatprep.mubr.bf16.mxu0 %v1151_v7  ;;  %2072 = vmatprep.mubr.bf16.mxu1 %v1151_v7  ;;  %v909_v0 = vsel %vm907_vm8, %v908_v55, %v906_v54  ;;  %v4152_v7 = vld [vmem:[%s5844_s5 + $0x38c] ss:$16 sps:$4 sm:$0xff]   ;;  %v4210_v54 = vld [vmem:[%s5846_s6 + $0xc8] ss:$16 sps:$4 sm:$0xff]   ;;  %v4215_v55 = vld [vmem:[%s5846_s6 + $0xe4] ss:$16 sps:$4 sm:$0xff]  }
 0x2ea   :  { %1991 = vmatmul.mubr.bf16.vlgmr.msra.gmra.mrb[36].mxu0 %v1150_v8  ;;  %2073 = vmatmul.mubr.bf16.vlgmr.msra.gmra.mrb[40].mxu1 %v1150_v8  ;;  %v910_v5 = vmax.f32 %v909_v0, 1e-06  ;;  %v4147_v8 = vld [vmem:[%s5844_s5 + $0x380] ss:$16 sps:$4 sm:$0xff]   ;;  %v4224_v0 = vld [vmem:[%s5846_s6 + $0x10c] ss:$16 sps:$4 sm:$0xff]  }
 0x2eb   :  { %2000 = vmatpush1.bf16.msra.mxu0 %v4075_v1  ;;  %2082 = vmatpush1.bf16.msra.mxu1 %v4078_v4  ;;  %v4141_v1 = vld [vmem:[%s5844_s5 + $0x360] ss:$16 sps:$4 sm:$0xff]   ;;  %v4144_v4 = vld [vmem:[%s5844_s5 + $0x368] ss:$16 sps:$4 sm:$0xff]  }
 0x2ec   :  { %2031 = vmatprep.mubr.bf16.mxu0 %v1153_v10  ;;  %2113 = vmatprep.mubr.bf16.mxu1 %v1153_v10  ;;  %4369 = vrcp.f32 %v910_v5  ;;  %v4158_v10 = vld [vmem:[%s5844_s5 + $0x3ac] ss:$16 sps:$4 sm:$0xff]   ;;  %v4227_v5 = vld [vmem:[%s5846_s6 + $0x124] ss:$16 sps:$4 sm:$0xff]  }
 0x2ed   :  { %2001 = vmatprep.subr.bf16.mxu0 %v4083_v46  ;;  %2083 = vmatprep.subr.bf16.mxu1 %v4086_v9  ;;  %v4150_v46 = vld [vmem:[%s5844_s5 + $0x388] ss:$16 sps:$4 sm:$0xff]   ;;  %v4155_v9 = vld [vmem:[%s5844_s5 + $0x3a4] ss:$16 sps:$4 sm:$0xff]  }
 0x2ef   :  { %2002 = vmatpush1.bf16.msra.mxu0 %v4081_v43  ;;  %2084 = vmatpush1.bf16.msra.mxu1 %v4084_v59  ;;  %v4153_v43 = vld [vmem:[%s5844_s5 + $0x3a0] ss:$16 sps:$4 sm:$0xff]   ;;  %v4156_v59 = vld [vmem:[%s5844_s5 + $0x3a8] ss:$16 sps:$4 sm:$0xff]  }
 0x2f0   :  { %2003 = vmatprep.subr.bf16.mxu0 %v4089_v12  ;;  %2085 = vmatprep.subr.bf16.mxu1 %v4092_v14  ;;  %v4161_v12 = vld [vmem:[%s5844_s5 + $0x3c4] ss:$16 sps:$4 sm:$0xff]   ;;  %v4164_v14 = vld [vmem:[%s5844_s5 + $0x3cc] ss:$16 sps:$4 sm:$0xff]  }
 0x2f3   :  { %2004 = vmatpush1.bf16.msra.mxu0 %v4087_v11  ;;  %2086 = vmatpush1.bf16.msra.mxu1 %v4090_v15  ;;  %v4159_v11 = vld [vmem:[%s5844_s5 + $0x3c0] ss:$16 sps:$4 sm:$0xff]   ;;  %v4162_v15 = vld [vmem:[%s5844_s5 + $0x3c8] ss:$16 sps:$4 sm:$0xff]  }
 0x2f4   :  { %2005 = vmatprep.subr.bf16.mxu0 %v4095_v2  ;;  %2087 = vmatprep.subr.bf16.mxu1 %v4098_v16  ;;  %v4167_v2 = vld [vmem:[%s5844_s5 + $0x3e4] ss:$16 sps:$4 sm:$0xff]   ;;  %v4170_v16 = vld [vmem:[%s5844_s5 + $0x3ec] ss:$16 sps:$4 sm:$0xff]  }
 0x2f7   :  { %2006 = vmatpush1.bf16.msra.mxu0 %v4093_v17  ;;  %2088 = vmatpush1.bf16.msra.mxu1 %v4096_v18  ;;  %v5378_v17 = vpop.eup %4369  ;;  %v4165_v18 = vld [vmem:[%s5844_s5 + $0x3e0] ss:$16 sps:$4 sm:$0xff]  }
 0x2f8   :  { %2007 = vmatprep.subr.bf16.mxu0 %v4101_v19  ;;  %2089 = vmatprep.subr.bf16.mxu1 %v4104_v20  ;;  %v4168_v19 = vld [vmem:[%s5844_s5 + $0x3e8] ss:$16 sps:$4 sm:$0xff]   ;;  %v1148_v20 = vmul.f32 %v5190_v63, %v5069_v56 }
 0x2f9   :  { %v4174_v56 = vld [vmem:[%s5846_s6 + $0x8] ss:$16 sps:$4 sm:$0xff]  }
 0x2fa   :  { %v1152_v25 = vpack.c.bf16 %v1148_v20, %v1148_v20  ;;  %v4254_v20 = vld [vmem:[%s5846_s6 + $0x1ac] ss:$16 sps:$4 sm:$0xff]  }
 0x2fb   :  { %2008 = vmatpush1.bf16.msra.mxu0 %v4099_v21  ;;  %2090 = vmatpush1.bf16.msra.mxu1 %v4102_v22  ;;  %v4173_v21 = vld [vmem:[%s5846_s6 + $0x4] ss:$16 sps:$4 sm:$0xff]   ;;  %v4176_v22 = vld [vmem:[%s5846_s6 + $0xc] ss:$16 sps:$4 sm:$0xff]  }
 0x2fc   :  { %2009 = vmatprep.subr.bf16.mxu0 %v4107_v23  ;;  %2091 = vmatprep.subr.bf16.mxu1 %v4110_v24  ;;  %v913_v23 = vmul.f32 %v5378_v17, %v5050_v34  ;;  %v4171_v24 = vld [vmem:[%s5846_s6] ss:$16 sps:$4 sm:$0xff]   ;;  %v4182_v34 = vld [vmem:[%s5846_s6 + $0x2c] ss:$16 sps:$4 sm:$0xff]  }
 0x2fe   :  { %v2123_v63 = vpack.c.bf16 %v913_v23, %v913_v23  ;;  %v4257_v23 = vld [vmem:[%s5846_s6 + $0x1c4] ss:$16 sps:$4 sm:$0xff]  }
 0x2ff   :  { %2010 = vmatpush1.bf16.msra.mxu0 %v4105_v26  ;;  %2092 = vmatpush1.bf16.msra.mxu1 %v4108_v27  ;;  %v4179_v26 = vld [vmem:[%s5846_s6 + $0x24] ss:$16 sps:$4 sm:$0xff]   ;;  %v4177_v27 = vld [vmem:[%s5846_s6 + $0x20] ss:$16 sps:$4 sm:$0xff]  }
 0x300   :  { %2011 = vmatprep.subr.bf16.mxu0 %v4113_v30  ;;  %2093 = vmatprep.subr.bf16.mxu1 %v4116_v31  ;;  %v4180_v30 = vld [vmem:[%s5846_s6 + $0x28] ss:$16 sps:$4 sm:$0xff]   ;;  %v4185_v31 = vld [vmem:[%s5846_s6 + $0x44] ss:$16 sps:$4 sm:$0xff]  }
 0x303   :  { %2012 = vmatpush1.bf16.msra.mxu0 %v4111_v32  ;;  %2094 = vmatpush1.bf16.msra.mxu1 %v4114_v35  ;;  %v4188_v32 = vld [vmem:[%s5846_s6 + $0x4c] ss:$16 sps:$4 sm:$0xff]   ;;  %v4183_v35 = vld [vmem:[%s5846_s6 + $0x40] ss:$16 sps:$4 sm:$0xff]  }
 0x304   :  { %2013 = vmatprep.subr.bf16.mxu0 %v4119_v36  ;;  %2095 = vmatprep.subr.bf16.mxu1 %v4122_v37  ;;  %v4186_v36 = vld [vmem:[%s5846_s6 + $0x48] ss:$16 sps:$4 sm:$0xff]   ;;  %v4191_v37 = vld [vmem:[%s5846_s6 + $0x64] ss:$16 sps:$4 sm:$0xff]  }
 0x307   :  { %2014 = vmatpush1.bf16.msra.mxu0 %v4117_v38  ;;  %2096 = vmatpush1.bf16.msra.mxu1 %v4120_v39  ;;  %v4194_v38 = vld [vmem:[%s5846_s6 + $0x6c] ss:$16 sps:$4 sm:$0xff]   ;;  %v4189_v39 = vld [vmem:[%s5846_s6 + $0x60] ss:$16 sps:$4 sm:$0xff]  }
 0x308   :  { %2015 = vmatprep.subr.bf16.mxu0 %v4125_v40  ;;  %2097 = vmatprep.subr.bf16.mxu1 %v4128_v41  ;;  %v4192_v40 = vld [vmem:[%s5846_s6 + $0x68] ss:$16 sps:$4 sm:$0xff]   ;;  %v4197_v41 = vld [vmem:[%s5846_s6 + $0x84] ss:$16 sps:$4 sm:$0xff]  }
 0x30b   :  { %2016 = vmatpush1.bf16.msra.mxu0 %v4123_v42  ;;  %2098 = vmatpush1.bf16.msra.mxu1 %v4126_v44  ;;  %v4195_v42 = vld [vmem:[%s5846_s6 + $0x80] ss:$16 sps:$4 sm:$0xff]   ;;  %v4198_v44 = vld [vmem:[%s5846_s6 + $0x88] ss:$16 sps:$4 sm:$0xff]  }
 0x30c   :  { %2017 = vmatprep.subr.bf16.mxu0 %v4131_v45  ;;  %2099 = vmatprep.subr.bf16.mxu1 %v4134_v47  ;;  %v4203_v45 = vld [vmem:[%s5846_s6 + $0xa4] ss:$16 sps:$4 sm:$0xff]   ;;  %v4206_v47 = vld [vmem:[%s5846_s6 + $0xac] ss:$16 sps:$4 sm:$0xff]  }
 0x30f   :  { %2018 = vmatpush1.bf16.msra.mxu0 %v4129_v50  ;;  %2100 = vmatpush1.bf16.msra.mxu1 %v4132_v51  ;;  %v4204_v50 = vld [vmem:[%s5846_s6 + $0xa8] ss:$16 sps:$4 sm:$0xff]   ;;  %v4209_v51 = vld [vmem:[%s5846_s6 + $0xc4] ss:$16 sps:$4 sm:$0xff]  }
 0x310   :  { %2019 = vmatprep.subr.bf16.mxu0 %v4137_v52  ;;  %2101 = vmatprep.subr.bf16.mxu1 %v4140_v53  ;;  %v4212_v52 = vld [vmem:[%s5846_s6 + $0xcc] ss:$16 sps:$4 sm:$0xff]   ;;  %v4207_v53 = vld [vmem:[%s5846_s6 + $0xc0] ss:$16 sps:$4 sm:$0xff]  }
 0x313   :  { %2020 = vmatpush1.bf16.msra.mxu0 %v4135_v57  ;;  %2102 = vmatpush1.bf16.msra.mxu1 %v4138_v58  ;;  %v4218_v57 = vld [vmem:[%s5846_s6 + $0xec] ss:$16 sps:$4 sm:$0xff]   ;;  %v4213_v58 = vld [vmem:[%s5846_s6 + $0xe0] ss:$16 sps:$4 sm:$0xff]  }
 0x314   :  { %2021 = vmatprep.subr.bf16.mxu0 %v4143_v60  ;;  %2103 = vmatprep.subr.bf16.mxu1 %v4146_v62  ;;  %v4216_v60 = vld [vmem:[%s5846_s6 + $0xe8] ss:$16 sps:$4 sm:$0xff]   ;;  %v4221_v62 = vld [vmem:[%s5846_s6 + $0x104] ss:$16 sps:$4 sm:$0xff]  }
 0x317   :  { %2022 = vmatpush1.bf16.msra.mxu0 %v4141_v1  ;;  %2104 = vmatpush1.bf16.msra.mxu1 %v4144_v4  ;;  %v4219_v1 = vld [vmem:[%s5846_s6 + $0x100] ss:$16 sps:$4 sm:$0xff]   ;;  %v4222_v4 = vld [vmem:[%s5846_s6 + $0x108] ss:$16 sps:$4 sm:$0xff]  }
 0x318   :  { %2023 = vmatprep.subr.bf16.mxu0 %v4149_v6  ;;  %2105 = vmatprep.subr.bf16.mxu1 %v4152_v7  ;;  %v4230_v6 = vld [vmem:[%s5846_s6 + $0x12c] ss:$16 sps:$4 sm:$0xff]   ;;  %v4225_v7 = vld [vmem:[%s5846_s6 + $0x120] ss:$16 sps:$4 sm:$0xff]  }
 0x31b   :  { %2024 = vmatpush1.bf16.msra.mxu0 %v4147_v8  ;;  %2106 = vmatpush1.bf16.msra.mxu1 %v4150_v46  ;;  %v4228_v8 = vld [vmem:[%s5846_s6 + $0x128] ss:$16 sps:$4 sm:$0xff]   ;;  %v4233_v46 = vld [vmem:[%s5846_s6 + $0x144] ss:$16 sps:$4 sm:$0xff]  }
 0x31c   :  { %2025 = vmatprep.subr.bf16.mxu0 %v4155_v9  ;;  %2107 = vmatprep.subr.bf16.mxu1 %v4158_v10  ;;  %v4236_v9 = vld [vmem:[%s5846_s6 + $0x14c] ss:$16 sps:$4 sm:$0xff]   ;;  %v4231_v10 = vld [vmem:[%s5846_s6 + $0x140] ss:$16 sps:$4 sm:$0xff]  }
 0x31f   :  { %2026 = vmatpush1.bf16.msra.mxu0 %v4153_v43  ;;  %2108 = vmatpush1.bf16.msra.mxu1 %v4156_v59  ;;  %v4234_v43 = vld [vmem:[%s5846_s6 + $0x148] ss:$16 sps:$4 sm:$0xff]   ;;  %v4239_v59 = vld [vmem:[%s5846_s6 + $0x164] ss:$16 sps:$4 sm:$0xff]  }
 0x320   :  { %2027 = vmatprep.subr.bf16.mxu0 %v4161_v12  ;;  %2109 = vmatprep.subr.bf16.mxu1 %v4164_v14  ;;  %v4242_v12 = vld [vmem:[%s5846_s6 + $0x16c] ss:$16 sps:$4 sm:$0xff]   ;;  %v4237_v14 = vld [vmem:[%s5846_s6 + $0x160] ss:$16 sps:$4 sm:$0xff]  }
 0x323   :  { %2028 = vmatpush1.bf16.msra.mxu0 %v4159_v11  ;;  %2110 = vmatpush1.bf16.msra.mxu1 %v4162_v15  ;;  %v4240_v11 = vld [vmem:[%s5846_s6 + $0x168] ss:$16 sps:$4 sm:$0xff]   ;;  %v4245_v15 = vld [vmem:[%s5846_s6 + $0x184] ss:$16 sps:$4 sm:$0xff]  }
 0x324   :  { %2029 = vmatprep.subr.bf16.mxu0 %v4167_v2  ;;  %2111 = vmatprep.subr.bf16.mxu1 %v4170_v16  ;;  %v4248_v2 = vld [vmem:[%s5846_s6 + $0x18c] ss:$16 sps:$4 sm:$0xff]   ;;  %v4243_v16 = vld [vmem:[%s5846_s6 + $0x180] ss:$16 sps:$4 sm:$0xff]  }
 0x327   :  { %2030 = vmatpush1.bf16.msra.mxu0 %v4165_v18  ;;  %2112 = vmatpush1.bf16.msra.mxu1 %v4168_v19  ;;  %v4246_v18 = vld [vmem:[%s5846_s6 + $0x188] ss:$16 sps:$4 sm:$0xff]   ;;  %v4251_v19 = vld [vmem:[%s5846_s6 + $0x1a4] ss:$16 sps:$4 sm:$0xff]  }
 0x328   :  { %2930 = vmatprep.subr.bf16.mxu0 %v4173_v21  ;;  %3012 = vmatprep.subr.bf16.mxu1 %v4176_v22  ;;  %v4249_v21 = vld [vmem:[%s5846_s6 + $0x1a0] ss:$16 sps:$4 sm:$0xff]   ;;  %v4252_v22 = vld [vmem:[%s5846_s6 + $0x1a8] ss:$16 sps:$4 sm:$0xff]  }
 0x32a   :  { %2032 = vmatmul.mubr.bf16.vlgmr.msra.gmra.mrb[36].mxu0 %v1152_v25  ;;  %2114 = vmatmul.mubr.bf16.vlgmr.msra.gmra.mrb[40].mxu1 %v1152_v25  ;;  %v4255_v25 = vld [vmem:[%s5846_s6 + $0x1c0] ss:$16 sps:$4 sm:$0xff]  }
 0x32b   :  { %2931 = vmatpush1.bf16.msra.mxu0 %v4171_v24  ;;  %2962 = vmatprep.mubr.bf16.mxu0 %v2123_v63  ;;  %v4260_v24 = vld [vmem:[%s5846_s6 + $0x1cc] ss:$16 sps:$4 sm:$0xff]  }
 0x32c   :  { %3013 = vmatpush1.bf16.msra.mxu1 %v4174_v56  ;;  %3044 = vmatprep.mubr.bf16.mxu1 %v2123_v63  ;;  %v4258_v56 = vld [vmem:[%s5846_s6 + $0x1c8] ss:$16 sps:$4 sm:$0xff]   ;;  %v4263_v63 = vld [vmem:[%s5846_s6 + $0x1e4] ss:$16 sps:$4 sm:$0xff]  }
 0x32d   :  { %2932 = vmatprep.subr.bf16.mxu0 %v4179_v26  ;;  %3014 = vmatprep.subr.bf16.mxu1 %v4182_v34  ;;  %v4266_v26 = vld [vmem:[%s5846_s6 + $0x1ec] ss:$16 sps:$4 sm:$0xff]   ;;  %v4261_v34 = vld [vmem:[%s5846_s6 + $0x1e0] ss:$16 sps:$4 sm:$0xff]  }
 0x32f   :  { %2933 = vmatpush1.bf16.msra.mxu0 %v4177_v27  ;;  %v4264_v27 = vld [vmem:[%s5846_s6 + $0x1e8] ss:$16 sps:$4 sm:$0xff]  }
 0x330   :  { %3015 = vmatpush1.bf16.msra.mxu1 %v4180_v30  ;;  %2934 = vmatprep.subr.bf16.mxu0 %v4185_v31  ;;  %v912_v30 = vmul.f32 %v5378_v17, %v5048_v33  ;;  %v4269_v31 = vld [vmem:[%s5846_s6 + $0x204] ss:$16 sps:$4 sm:$0xff]   ;;  %v4270_v33 = vld [vmem:[%s5846_s6 + $0x208] ss:$16 sps:$4 sm:$0xff]  }
 0x331   :  { %3016 = vmatprep.subr.bf16.mxu1 %v4188_v32  ;;  %v4272_v32 = vld [vmem:[%s5846_s6 + $0x20c] ss:$16 sps:$4 sm:$0xff]  }
 0x333   :  { %2935 = vmatpush1.bf16.msra.mxu0 %v4183_v35  ;;  %v915_v35 = vmul.f32 %v5378_v17, %v5076_v61  ;;  %v4278_v61 = vld [vmem:[%s5846_s6 + $0x22c] ss:$16 sps:$4 sm:$0xff]  }
 0x334   :  { %3017 = vmatpush1.bf16.msra.mxu1 %v4186_v36  ;;  %2936 = vmatprep.subr.bf16.mxu0 %v4191_v37  ;;  %v4267_v36 = vld [vmem:[%s5846_s6 + $0x200] ss:$16 sps:$4 sm:$0xff]   ;;  %v2122_v37 = vpack.c.bf16 %v912_v30, %v912_v30  ;;  %v4348_v30 = vld [vmem:[%s5846_s6 + $0x3a8] ss:$16 sps:$4 sm:$0xff]  }
 0x335   :  { %3018 = vmatprep.subr.bf16.mxu1 %v4194_v38  ;;  %v4275_v38 = vld [vmem:[%s5846_s6 + $0x224] ss:$16 sps:$4 sm:$0xff]  }
 0x337   :  { %2937 = vmatpush1.bf16.msra.mxu0 %v4189_v39  ;;  %v2125_v39 = vpack.c.bf16 %v915_v35, %v915_v35  ;;  %v4351_v35 = vld [vmem:[%s5846_s6 + $0x3c0] ss:$16 sps:$4 sm:$0xff]  }
 0x338   :  { %3019 = vmatpush1.bf16.msra.mxu1 %v4192_v40  ;;  %2938 = vmatprep.subr.bf16.mxu0 %v4197_v41  ;;  %v4273_v40 = vld [vmem:[%s5846_s6 + $0x220] ss:$16 sps:$4 sm:$0xff]   ;;  %v4276_v41 = vld [vmem:[%s5846_s6 + $0x228] ss:$16 sps:$4 sm:$0xff]  }
 0x339   :  { %3020 = vmatprep.subr.bf16.mxu1 %v4200_v3  ;;  %v4281_v3 = vld [vmem:[%s5846_s6 + $0x244] ss:$16 sps:$4 sm:$0xff]  }
 0x33b   :  { %2939 = vmatpush1.bf16.msra.mxu0 %v4195_v42  ;;  %v4284_v42 = vld [vmem:[%s5846_s6 + $0x24c] ss:$16 sps:$4 sm:$0xff]  }
 0x33c   :  { %3021 = vmatpush1.bf16.msra.mxu1 %v4198_v44  ;;  %2940 = vmatprep.subr.bf16.mxu0 %v4203_v45  ;;  %v4279_v44 = vld [vmem:[%s5846_s6 + $0x240] ss:$16 sps:$4 sm:$0xff]   ;;  %v4282_v45 = vld [vmem:[%s5846_s6 + $0x248] ss:$16 sps:$4 sm:$0xff]  }
 0x33d   :  { %3022 = vmatprep.subr.bf16.mxu1 %v4206_v47  ;;  %v4287_v47 = vld [vmem:[%s5846_s6 + $0x264] ss:$16 sps:$4 sm:$0xff]  }
 0x33f   :  { %2941 = vmatpush1.bf16.msra.mxu0 %v4201_v49  ;;  %v4290_v49 = vld [vmem:[%s5846_s6 + $0x26c] ss:$16 sps:$4 sm:$0xff]  }
 0x340   :  { %3023 = vmatpush1.bf16.msra.mxu1 %v4204_v50  ;;  %2942 = vmatprep.subr.bf16.mxu0 %v4209_v51  ;;  %v4285_v50 = vld [vmem:[%s5846_s6 + $0x260] ss:$16 sps:$4 sm:$0xff]   ;;  %v4288_v51 = vld [vmem:[%s5846_s6 + $0x268] ss:$16 sps:$4 sm:$0xff]  }
 0x341   :  { %3024 = vmatprep.subr.bf16.mxu1 %v4212_v52  ;;  %v4293_v52 = vld [vmem:[%s5846_s6 + $0x284] ss:$16 sps:$4 sm:$0xff]  }
 0x343   :  { %2943 = vmatpush1.bf16.msra.mxu0 %v4207_v53  ;;  %v4296_v53 = vld [vmem:[%s5846_s6 + $0x28c] ss:$16 sps:$4 sm:$0xff]  }
 0x344   :  { %3025 = vmatpush1.bf16.msra.mxu1 %v4210_v54  ;;  %2944 = vmatprep.subr.bf16.mxu0 %v4215_v55  ;;  %v4291_v54 = vld [vmem:[%s5846_s6 + $0x280] ss:$16 sps:$4 sm:$0xff]   ;;  %v4294_v55 = vld [vmem:[%s5846_s6 + $0x288] ss:$16 sps:$4 sm:$0xff]  }
 0x345   :  { %3026 = vmatprep.subr.bf16.mxu1 %v4218_v57  ;;  %v4299_v57 = vld [vmem:[%s5846_s6 + $0x2a4] ss:$16 sps:$4 sm:$0xff]  }
 0x347   :  { %2945 = vmatpush1.bf16.msra.mxu0 %v4213_v58  ;;  %v4302_v58 = vld [vmem:[%s5846_s6 + $0x2ac] ss:$16 sps:$4 sm:$0xff]  }
 0x348   :  { %3027 = vmatpush1.bf16.msra.mxu1 %v4216_v60  ;;  %2946 = vmatprep.subr.bf16.mxu0 %v4221_v62  ;;  %v4297_v60 = vld [vmem:[%s5846_s6 + $0x2a0] ss:$16 sps:$4 sm:$0xff]   ;;  %v4300_v62 = vld [vmem:[%s5846_s6 + $0x2a8] ss:$16 sps:$4 sm:$0xff]  }
 0x349   :  { %3028 = vmatprep.subr.bf16.mxu1 %v4224_v0  ;;  %v4305_v0 = vld [vmem:[%s5846_s6 + $0x2c4] ss:$16 sps:$4 sm:$0xff]  }
 0x34b   :  { %2947 = vmatpush1.bf16.msra.mxu0 %v4219_v1  ;;  %v4308_v1 = vld [vmem:[%s5846_s6 + $0x2cc] ss:$16 sps:$4 sm:$0xff]  }
 0x34c   :  { %3029 = vmatpush1.bf16.msra.mxu1 %v4222_v4  ;;  %2948 = vmatprep.subr.bf16.mxu0 %v4227_v5  ;;  %v4303_v4 = vld [vmem:[%s5846_s6 + $0x2c0] ss:$16 sps:$4 sm:$0xff]   ;;  %v4306_v5 = vld [vmem:[%s5846_s6 + $0x2c8] ss:$16 sps:$4 sm:$0xff]  }
 0x34d   :  { %3030 = vmatprep.subr.bf16.mxu1 %v4230_v6  ;;  %v4311_v6 = vld [vmem:[%s5846_s6 + $0x2e4] ss:$16 sps:$4 sm:$0xff]  }
 0x34f   :  { %2949 = vmatpush1.bf16.msra.mxu0 %v4225_v7  ;;  %v4314_v7 = vld [vmem:[%s5846_s6 + $0x2ec] ss:$16 sps:$4 sm:$0xff]  }
 0x350   :  { %3031 = vmatpush1.bf16.msra.mxu1 %v4228_v8  ;;  %2950 = vmatprep.subr.bf16.mxu0 %v4233_v46  ;;  %v4309_v8 = vld [vmem:[%s5846_s6 + $0x2e0] ss:$16 sps:$4 sm:$0xff]   ;;  %v4312_v46 = vld [vmem:[%s5846_s6 + $0x2e8] ss:$16 sps:$4 sm:$0xff]  }
 0x351   :  { %3032 = vmatprep.subr.bf16.mxu1 %v4236_v9  ;;  %v4317_v9 = vld [vmem:[%s5846_s6 + $0x304] ss:$16 sps:$4 sm:$0xff]  }
 0x353   :  { %2951 = vmatpush1.bf16.msra.mxu0 %v4231_v10  ;;  %v4320_v10 = vld [vmem:[%s5846_s6 + $0x30c] ss:$16 sps:$4 sm:$0xff]  }
 0x354   :  { %3033 = vmatpush1.bf16.msra.mxu1 %v4234_v43  ;;  %2952 = vmatprep.subr.bf16.mxu0 %v4239_v59  ;;  %v4315_v43 = vld [vmem:[%s5846_s6 + $0x300] ss:$16 sps:$4 sm:$0xff]   ;;  %v4318_v59 = vld [vmem:[%s5846_s6 + $0x308] ss:$16 sps:$4 sm:$0xff]  }
 0x355   :  { %3034 = vmatprep.subr.bf16.mxu1 %v4242_v12  ;;  %v4323_v12 = vld [vmem:[%s5846_s6 + $0x324] ss:$16 sps:$4 sm:$0xff]  }
 0x357   :  { %2953 = vmatpush1.bf16.msra.mxu0 %v4237_v14  ;;  %v4326_v14 = vld [vmem:[%s5846_s6 + $0x32c] ss:$16 sps:$4 sm:$0xff]  }
 0x358   :  { %3035 = vmatpush1.bf16.msra.mxu1 %v4240_v11  ;;  %2954 = vmatprep.subr.bf16.mxu0 %v4245_v15  ;;  %v4321_v11 = vld [vmem:[%s5846_s6 + $0x320] ss:$16 sps:$4 sm:$0xff]   ;;  %v4324_v15 = vld [vmem:[%s5846_s6 + $0x328] ss:$16 sps:$4 sm:$0xff]  }
 0x359   :  { %3036 = vmatprep.subr.bf16.mxu1 %v4248_v2  ;;  %v4329_v2 = vld [vmem:[%s5846_s6 + $0x344] ss:$16 sps:$4 sm:$0xff]  }
 0x35b   :  { %2955 = vmatpush1.bf16.msra.mxu0 %v4243_v16  ;;  %v4332_v16 = vld [vmem:[%s5846_s6 + $0x34c] ss:$16 sps:$4 sm:$0xff]  }
 0x35c   :  { %3037 = vmatpush1.bf16.msra.mxu1 %v4246_v18  ;;  %2956 = vmatprep.subr.bf16.mxu0 %v4251_v19  ;;  %v4327_v18 = vld [vmem:[%s5846_s6 + $0x340] ss:$16 sps:$4 sm:$0xff]   ;;  %v4330_v19 = vld [vmem:[%s5846_s6 + $0x348] ss:$16 sps:$4 sm:$0xff]  }
 0x35d   :  { %3038 = vmatprep.subr.bf16.mxu1 %v4254_v20  ;;  %v4335_v20 = vld [vmem:[%s5846_s6 + $0x364] ss:$16 sps:$4 sm:$0xff]  }
 0x35f   :  { %2957 = vmatpush1.bf16.msra.mxu0 %v4249_v21  ;;  %v4338_v21 = vld [vmem:[%s5846_s6 + $0x36c] ss:$16 sps:$4 sm:$0xff]  }
 0x360   :  { %3039 = vmatpush1.bf16.msra.mxu1 %v4252_v22  ;;  %2958 = vmatprep.subr.bf16.mxu0 %v4257_v23  ;;  %v4333_v22 = vld [vmem:[%s5846_s6 + $0x360] ss:$16 sps:$4 sm:$0xff]   ;;  %v4336_v23 = vld [vmem:[%s5846_s6 + $0x368] ss:$16 sps:$4 sm:$0xff]  }
 0x361   :  { %3040 = vmatprep.subr.bf16.mxu1 %v4260_v24  ;;  %v4341_v24 = vld [vmem:[%s5846_s6 + $0x384] ss:$16 sps:$4 sm:$0xff]  }
 0x363   :  { %2959 = vmatpush1.bf16.msra.mxu0 %v4255_v25  ;;  %v4344_v25 = vld [vmem:[%s5846_s6 + $0x38c] ss:$16 sps:$4 sm:$0xff]  }
 0x364   :  { %3041 = vmatpush1.bf16.msra.mxu1 %v4258_v56  ;;  %2960 = vmatprep.subr.bf16.mxu0 %v4263_v63  ;;  %v4339_v56 = vld [vmem:[%s5846_s6 + $0x380] ss:$16 sps:$4 sm:$0xff]   ;;  %v4342_v63 = vld [vmem:[%s5846_s6 + $0x388] ss:$16 sps:$4 sm:$0xff]  }
 0x365   :  { %3042 = vmatprep.subr.bf16.mxu1 %v4266_v26  ;;  %v4347_v26 = vld [vmem:[%s5846_s6 + $0x3a4] ss:$16 sps:$4 sm:$0xff]  }
 0x367   :  { %2961 = vmatpush1.bf16.msra.mxu0 %v4261_v34  ;;  %v4350_v34 = vld [vmem:[%s5846_s6 + $0x3ac] ss:$16 sps:$4 sm:$0xff]  }
 0x368   :  { %3043 = vmatpush1.bf16.msra.mxu1 %v4264_v27  ;;  %2971 = vmatprep.subr.bf16.mxu0 %v4269_v31  ;;  %v4345_v27 = vld [vmem:[%s5846_s6 + $0x3a0] ss:$16 sps:$4 sm:$0xff]   ;;  %v4353_v31 = vld [vmem:[%s5846_s6 + $0x3c4] ss:$16 sps:$4 sm:$0xff]  }
 0x369   :  { %3053 = vmatprep.subr.bf16.mxu1 %v4272_v32  ;;  %v4356_v32 = vld [vmem:[%s5846_s6 + $0x3cc] ss:$16 sps:$4 sm:$0xff]  }
 0x36a   :  { %2963 = vmatmul.mubr.bf16.vlgmr.msra.gmra.mrb[40].mxu0 %v2122_v37 }
 0x36b   :  { %3045 = vmatmul.mubr.bf16.vlgmr.msra.gmra.mrb[44].mxu1 %v2122_v37  ;;  %2972 = vmatpush1.bf16.msra.mxu0 %v4267_v36  ;;  %v4354_v36 = vld [vmem:[%s5846_s6 + $0x3c8] ss:$16 sps:$4 sm:$0xff]   ;;  %v4359_v37 = vld [vmem:[%s5846_s6 + $0x3e4] ss:$16 sps:$4 sm:$0xff]  }
 0x36c   :  { %3003 = vmatprep.mubr.bf16.mxu0 %v2125_v39  ;;  %3054 = vmatpush1.bf16.msra.mxu1 %v4270_v33  ;;  %v4362_v33 = vld [vmem:[%s5846_s6 + $0x3ec] ss:$16 sps:$4 sm:$0xff]  }
 0x36d   :  { %3085 = vmatprep.mubr.bf16.mxu1 %v2125_v39  ;;  %2973 = vmatprep.subr.bf16.mxu0 %v4275_v38  ;;  %v4357_v38 = vld [vmem:[%s5846_s6 + $0x3e0] ss:$16 sps:$4 sm:$0xff]   ;;  %v4360_v39 = vld [vmem:[%s5846_s6 + $0x3e8] ss:$16 sps:$4 sm:$0xff]  }
 0x36e   :  { %3055 = vmatprep.subr.bf16.mxu1 %v4278_v61  ;;  %v914_v61 = vmul.f32 %v5378_v17, %v5060_v48 }
 0x36f   :  { %2974 = vmatpush1.bf16.msra.mxu0 %v4273_v40 }
 0x370   :  { %3056 = vmatpush1.bf16.msra.mxu1 %v4276_v41  ;;  %2975 = vmatprep.subr.bf16.mxu0 %v4281_v3  ;;  %v2124_v40 = vpack.c.bf16 %v914_v61, %v914_v61  ;;  %v1284_v41 = vsub.s32 2, %v4925_v28  ;;  %v1288_v3 = vsub.s32 6, %v4925_v28 }
 0x371   :  { %3057 = vmatprep.subr.bf16.mxu1 %v4284_v42  ;;  %v4387_v42 = vld [vmem:[%s5845_s7] sm:$0xff] }
 0x372   :  { %v1289_v17 = vrot.slane %v4387_v42, %v1288_v3 }
 0x373   :  { %2976 = vmatpush1.bf16.msra.mxu0 %v4279_v44  ;;  %v1285_v44 = vrot.slane %v4387_v42, %v1284_v41 }
 0x374   :  { %3058 = vmatpush1.bf16.msra.mxu1 %v4282_v45  ;;  %2977 = vmatprep.subr.bf16.mxu0 %v4287_v47  ;;  %v4388_v45 = vld [vmem:[%s5845_s7 + $0x8] sm:$0xff] }
 0x375   :  { %3059 = vmatprep.subr.bf16.mxu1 %v4290_v49  ;;  %v1293_v48 = vrot.slane %v4388_v45, %v1284_v41  ;;  %v1297_v47 = vrot.slane %v4388_v45, %v1288_v3  ;;  %v1305_v49 = vrot.slane %v1285_v44, %v1284_v41 }
 0x377   :  { %2978 = vmatpush1.bf16.msra.mxu0 %v4285_v50  ;;  %v1313_v50 = vrot.slane %v1293_v48, %v1284_v41 }
 0x378   :  { %3060 = vmatpush1.bf16.msra.mxu1 %v4288_v51  ;;  %2979 = vmatprep.subr.bf16.mxu0 %v4293_v52  ;;  %v1309_v51 = vrot.slane %v1289_v17, %v1284_v41  ;;  %v1317_v52 = vrot.slane %v1297_v47, %v1284_v41 }
 0x379   :  { %3061 = vmatprep.subr.bf16.mxu1 %v4296_v53 }
 0x37b   :  { %2980 = vmatpush1.bf16.msra.mxu0 %v4291_v54 }
 0x37c   :  { %3062 = vmatpush1.bf16.msra.mxu1 %v4294_v55  ;;  %2981 = vmatprep.subr.bf16.mxu0 %v4299_v57 }
 0x37d   :  { %3063 = vmatprep.subr.bf16.mxu1 %v4302_v58 }
 0x37f   :  { %2982 = vmatpush1.bf16.msra.mxu0 %v4297_v60 }
 0x380   :  { %3064 = vmatpush1.bf16.msra.mxu1 %v4300_v62  ;;  %2983 = vmatprep.subr.bf16.mxu0 %v4305_v0 }
 0x381   :  { %3065 = vmatprep.subr.bf16.mxu1 %v4308_v1 }
 0x383   :  { %2984 = vmatpush1.bf16.msra.mxu0 %v4303_v4 }
 0x384   :  { %3066 = vmatpush1.bf16.msra.mxu1 %v4306_v5  ;;  %2985 = vmatprep.subr.bf16.mxu0 %v4311_v6 }
 0x385   :  { %3067 = vmatprep.subr.bf16.mxu1 %v4314_v7 }
 0x387   :  { %2986 = vmatpush1.bf16.msra.mxu0 %v4309_v8 }
 0x388   :  { %3068 = vmatpush1.bf16.msra.mxu1 %v4312_v46  ;;  %2987 = vmatprep.subr.bf16.mxu0 %v4317_v9 }
 0x389   :  { %3069 = vmatprep.subr.bf16.mxu1 %v4320_v10 }
 0x38b   :  { %2988 = vmatpush1.bf16.msra.mxu0 %v4315_v43 }
 0x38c   :  { %3070 = vmatpush1.bf16.msra.mxu1 %v4318_v59  ;;  %2989 = vmatprep.subr.bf16.mxu0 %v4323_v12 }
 0x38d   :  { %3071 = vmatprep.subr.bf16.mxu1 %v4326_v14 }
 0x38f   :  { %2990 = vmatpush1.bf16.msra.mxu0 %v4321_v11 }
 0x390   :  { %3072 = vmatpush1.bf16.msra.mxu1 %v4324_v15  ;;  %2991 = vmatprep.subr.bf16.mxu0 %v4329_v2  ;;  %v2256_v2 = vsub.s32 3, %v4925_v28 }
 0x391   :  { %3073 = vmatprep.subr.bf16.mxu1 %v4332_v16  ;;  %v2260_v16 = vsub.s32 7, %v4925_v28 }
 0x393   :  { %2992 = vmatpush1.bf16.msra.mxu0 %v4327_v18  ;;  %v2257_v18 = vrot.slane %v4387_v42, %v2256_v2 }
 0x394   :  { %3074 = vmatpush1.bf16.msra.mxu1 %v4330_v19  ;;  %2993 = vmatprep.subr.bf16.mxu0 %v4335_v20  ;;  %v2265_v19 = vrot.slane %v4388_v45, %v2256_v2  ;;  %v2261_v20 = vrot.slane %v4387_v42, %v2260_v16 }
 0x395   :  { %3075 = vmatprep.subr.bf16.mxu1 %v4338_v21  ;;  %v2269_v21 = vrot.slane %v4388_v45, %v2260_v16 }
 0x397   :  { %2994 = vmatpush1.bf16.msra.mxu0 %v4333_v22  ;;  %v2277_v22 = vrot.slane %v2257_v18, %v2256_v2 }
 0x398   :  { %3076 = vmatpush1.bf16.msra.mxu1 %v4336_v23  ;;  %2995 = vmatprep.subr.bf16.mxu0 %v4341_v24  ;;  %v2285_v23 = vrot.slane %v2265_v19, %v2256_v2  ;;  %v2281_v24 = vrot.slane %v2261_v20, %v2256_v2 }
 0x399   :  { %3077 = vmatprep.subr.bf16.mxu1 %v4344_v25  ;;  %v2289_v25 = vrot.slane %v2269_v21, %v2256_v2 }
 0x39b   :  { %2996 = vmatpush1.bf16.msra.mxu0 %v4339_v56 }
 0x39c   :  { %3078 = vmatpush1.bf16.msra.mxu1 %v4342_v63  ;;  %2997 = vmatprep.subr.bf16.mxu0 %v4347_v26 }
 0x39d   :  { %3079 = vmatprep.subr.bf16.mxu1 %v4350_v34 }
 0x39f   :  { %2998 = vmatpush1.bf16.msra.mxu0 %v4345_v27 }
 0x3a0   :  { %3080 = vmatpush1.bf16.msra.mxu1 %v4348_v30  ;;  %2999 = vmatprep.subr.bf16.mxu0 %v4353_v31 }
 0x3a1   :  { %3081 = vmatprep.subr.bf16.mxu1 %v4356_v32 }
 0x3a3   :  { %3000 = vmatpush1.bf16.msra.mxu0 %v4351_v35 }
 0x3a4   :  { %3082 = vmatpush1.bf16.msra.mxu1 %v4354_v36  ;;  %3001 = vmatprep.subr.bf16.mxu0 %v4359_v37 }
 0x3a5   :  { %3083 = vmatprep.subr.bf16.mxu1 %v4362_v33 }
 0x3a7   :  { %3002 = vmatpush1.bf16.msra.mxu0 %v4357_v38 }
 0x3a8   :  { %3084 = vmatpush1.bf16.msra.mxu1 %v4360_v39 }
 0x3aa   :  { %3004 = vmatmul.mubr.bf16.vlgmr.msra.gmra.mrb[40].mxu0 %v2124_v40 }
 0x3ab   :  { %3086 = vmatmul.mubr.bf16.vlgmr.msra.gmra.mrb[44].mxu1 %v2124_v40 }
 0x3fd   :  { %v2033_v53 = vpop.f32.mrb[36].mxu0  ;;  %v2115_v54 = vpop.f32.mrb[40].mxu1 }
 0x3fe   :  { %v5788_v55 = vadd.f32 %v2033_v53, %v1305_v49  ;;  %v5790_v57 = vadd.f32 %v2115_v54, %v1313_v50  ;;  %v2035_v58 = vpop.f32.mrb[37].mxu0  ;;  %v2117_v60 = vpop.f32.mrb[41].mxu1 }
 0x3ff   :  { %v5792_v62 = vadd.f32 %v2035_v58, %v1309_v51  ;;  %v5794_v0 = vadd.f32 %v2117_v60, %v1317_v52  ;;  %v2037_v1 = vpop.f32.mrb[38].mxu0  ;;  %v2119_v4 = vpop.f32.mrb[42].mxu1 }
 0x400   :  { %v3094_v5 = vmul.f32 %v5788_v55, %v5788_v55  ;;  %v2038_v6 = vpop.f32.mrb[39].mxu0  ;;  %v2120_v7 = vpop.f32.mrb[43].mxu1  ;;  %v3096_v8 = vmul.f32 %v5790_v57, %v5790_v57 }
 0x401   :  { %v3095_v46 = vmul.f32 %v5792_v62, %v5792_v62  ;;  %v3097_v43 = vmul.f32 %v5794_v0, %v5794_v0 }
 0x402   :  { %v3098_v9 = vsel %vm893_vm4, %v3094_v5, 0.0  ;;  %v3101_v12 = vsel %vm893_vm4, %v3096_v8, 0.0 }
 0x403   :  { %v3099_v10 = vsel %vm893_vm4, %v3095_v46, 0.0  ;;  %v3103_v11 = vsel %vm893_vm4, %v3097_v43, 0.0 }
 0x404   :  { %v3100_v59 = vadd.f32 %v3099_v10, %v3098_v9 }
 0x406   :  { %v3102_v14 = vadd.f32 %v3101_v12, %v3100_v59 }
 0x408   :  { %v3104_v15 = vadd.f32 %v3103_v11, %v3102_v14 }
 0x40a   :  { %3105 = vadd.xlane.f32.xlu0 %v3104_v15 }
 0x47d   :  { %v3005_v56 = vpop.f32.mrb[40].mxu0 }
 0x47e   :  { %v3890_v63 = vadd.f32 %v3005_v56, %v2277_v22  ;;  %v3087_v26 = vpop.f32.mrb[44].mxu1  ;;  %v3007_v34 = vpop.f32.mrb[41].mxu0 }
 0x47f   :  { %v3892_v27 = vadd.f32 %v3087_v26, %v2285_v23  ;;  %v3891_v30 = vadd.f32 %v3007_v34, %v2281_v24  ;;  %v3089_v31 = vpop.f32.mrb[45].mxu1  ;;  %v3009_v32 = vpop.f32.mrb[42].mxu0 }
 0x480   :  { %v3120_v35 = vmul.f32 %v3890_v63, %v3890_v63  ;;  %v3893_v36 = vadd.f32 %v3089_v31, %v2289_v25  ;;  %v3091_v37 = vpop.f32.mrb[46].mxu1  ;;  %v3010_v33 = vpop.f32.mrb[43].mxu0 }
 0x481   :  { %v3122_v38 = vmul.f32 %v3892_v27, %v3892_v27  ;;  %v3121_v39 = vmul.f32 %v3891_v30, %v3891_v30  ;;  %v3092_v61 = vpop.f32.mrb[47].mxu1 }
 0x482   :  { %v3124_v40 = vsel %vm893_vm4, %v3120_v35, 0.0  ;;  %v3123_v3 = vmul.f32 %v3893_v36, %v3893_v36 }
 0x483   :  { %v3125_v41 = vsel %vm893_vm4, %v3121_v39, 0.0  ;;  %v3127_v44 = vsel %vm893_vm4, %v3122_v38, 0.0 }
 0x484   :  { %v3126_v42 = vadd.f32 %v3125_v41, %v3124_v40  ;;  %v3129_v48 = vsel %vm893_vm4, %v3123_v3, 0.0 }
 0x486   :  { %v3128_v45 = vadd.f32 %v3127_v44, %v3126_v42 }
 0x488   :  { %v3130_v17 = vadd.f32 %v3129_v48, %v3128_v45 }
 0x48a   :  { %3131 = vadd.xlane.f32.xlu1 %v3130_v17  ;;  %v3747_v17 = vsel %vm3288_vm2, 1.0, %v4390_v13 }
 0x497   :  { %v3106_v47 = vpop.xlane.xlu0 %3105 }
 0x498   :  { %4371 = vrsqrt.f32 %v3106_v47  ;;  %vm3109_vm9 = vcmp.eq.f32.partialorder %v3106_v47, inf  ;;  %v3112_v51 = vand.u32 2147483648, %v3106_v47  ;;  %vm3111_vm10 = vcmp.eq.f32.partialorder %v3106_v47, 0.0 }
 0x4a2   :  { %v4372_v49 = vpop.eup %4371 }
 0x4a3   :  { %v3108_v50 = vmul.f32 %v4372_v49, %v3106_v47 }
 0x4a5   :  { %v3110_v52 = vsel %vm3109_vm9, %v3106_v47, %v3108_v50  ;;  %vm3425_vm9 = vcmp.eq.s32.totalorder %v4927_v29, 2 }
 0x4a6   :  { %v3113_v53 = vsel %vm3111_vm10, %v3112_v51, %v3110_v52  ;;  %vm3424_vm10 = vcmp.eq.s32.totalorder %v4927_v29, 1 }
 0x4a7   :  { %v3114_v54 = vmax.f32 %v3113_v53, 1e-08 }
 0x4a9   :  { %4373 = vrcp.f32 %v3114_v54 }
 0x4b3   :  { %v4374_v58 = vpop.eup %4373 }
 0x4b4   :  { %v3117_v60 = vmul.f32 %v4374_v58, %v5792_v62  ;;  %v3116_v1 = vmul.f32 %v4374_v58, %v5788_v55  ;;  %v3119_v4 = vmul.f32 %v4374_v58, %v5794_v0  ;;  %v3118_v55 = vmul.f32 %v4374_v58, %v5790_v57 }
 0x4b6   :  { %3146 = vmatprep.subr.mxu0 %v3117_v60 }
 0x4b7   :  { %3147 = vmatpush1.xpose.msra.mxu0 %v3116_v1 }
 0x4b8   :  { %3216 = vmatprep.subr.mxu0 %v3119_v4 }
 0x517   :  { %v3132_v5 = vpop.xlane.xlu1 %3131 }
 0x518   :  { %4375 = vrsqrt.f32 %v3132_v5  ;;  %vm3135_vm11 = vcmp.eq.f32.partialorder %v3132_v5, inf  ;;  %v3138_v8 = vand.u32 2147483648, %v3132_v5  ;;  %vm3137_vm12 = vcmp.eq.f32.partialorder %v3132_v5, 0.0 }
 0x522   :  { %v4376_v6 = vpop.eup %4375 }
 0x523   :  { %v3134_v7 = vmul.f32 %v4376_v6, %v3132_v5 }
 0x525   :  { %v3136_v46 = vsel %vm3135_vm11, %v3132_v5, %v3134_v7  ;;  %vm3423_vm11 = vcmp.eq.s32.totalorder %v4927_v29, 0 }
 0x526   :  { %v3139_v9 = vsel %vm3137_vm12, %v3138_v8, %v3136_v46 }
 0x527   :  { %v3140_v10 = vmax.f32 %v3139_v9, 1e-08 }
 0x529   :  { %4377 = vrcp.f32 %v3140_v10 }
 0x533   :  { %v4378_v43 = vpop.eup %4377 }
 0x534   :  { %v3143_v62 = vmul.f32 %v4378_v43, %v3891_v30  ;;  %v3142_v59 = vmul.f32 %v4378_v43, %v3890_v63  ;;  %v3145_v0 = vmul.f32 %v4378_v43, %v3893_v36  ;;  %v3144_v12 = vmul.f32 %v4378_v43, %v3892_v27 }
 0x536   :  { %3210 = vmatprep.mubr.f32.mxu0 %v3143_v62 }
 0x537   :  { %3211 = vmatmul.mubr.f32.vlgmr.msra.gmra.mrb[44].mxu0 %v3142_v59 }
 0x538   :  { %3217 = vmatpush1.xpose.msra.mxu0 %v3118_v55  ;;  %3280 = vmatprep.mubr.f32.mxu0 %v3145_v0 }
 0x53f   :  { %3281 = vmatmul.mubr.f32.vlgmr.msra.gmra.mrb[44].mxu0 %v3144_v12 }
 0x612   :  { %v3282_v14 = vpop.f32.mrb[44].mxu0 }
 0x613   :  { %v3284_v11 = vpop.f32.mrb[45].mxu0  ;;  %v3303_v15 = vsel %vm3292_vm13, %v3282_v14, -inf  ;;  %v3291_v50 = vmul.f32 %v3747_v17, %v3282_v14 }
 0x614   :  { %3304 = vmax.xlane.f32.xlu0 %v3303_v15  ;;  %v3315_v2 = vrot.slane %v3303_v15, 4 }
 0x615   :  { %v3293_v52 = vsel %vm3292_vm13, %v3291_v50, 0.0 }
 0x616   :  { %v3316_v16 = vmax.f32 %v3303_v15, %v3315_v2 }
 0x618   :  { %v3317_v18 = vrot.slane %v3316_v16, 2 }
 0x61a   :  { %v3318_v19 = vmax.f32 %v3316_v16, %v3317_v18 }
 0x61c   :  { %v3319_v20 = vrot.slane %v3318_v19, 1 }
 0x61e   :  { %v3320_v21 = vmax.f32 %v3318_v19, %v3319_v20 }
 0x620   :  { %v3321_v22 = vsub.f32 %v3282_v14, %v3320_v21  ;;  %vm3395_vm14 = vcmp.eq.f32.partialorder %v3282_v14, %v3320_v21 }
 0x621   :  { %v3396_v35 = vsel %vm3395_vm14, %v4925_v28, 2 }
 0x622   :  { %v3322_v57 = vmul.f32 1.442695, %v3321_v22  ;;  %v3397_v36 = vsel %vm3292_vm13, %v3396_v35, 2147483647 }
 0x623   :  { %v3398_v37 = vrot.slane %v3397_v36, 4 }
 0x624   :  { %4379 = vpow2.f32 %v3322_v57 }
 0x625   :  { %vm3399_vm15 = vcmp.lt.s32.totalorder %v3397_v36, %v3398_v37 }
 0x626   :  { %v3400_v33 = vsel %vm3399_vm15, %v3397_v36, %v3398_v37 }
 0x627   :  { %v3401_v40 = vrot.slane %v3400_v33, 2 }
 0x629   :  { %vm3402_vm1 = vcmp.lt.s32.totalorder %v3400_v33, %v3401_v40 }
 0x62a   :  { %v3403_v45 = vsel %vm3402_vm1, %v3400_v33, %v3401_v40 }
 0x62b   :  { %v3404_v48 = vrot.slane %v3403_v45, 1 }
 0x62d   :  { %vm3405_vm3 = vcmp.lt.s32.totalorder %v3403_v45, %v3404_v48 }
 0x62e   :  { %v4380_v23 = vpop.eup %4379  ;;  %v3406_v51 = vsel %vm3405_vm3, %v3403_v45, %v3404_v48 }
 0x62f   :  { %v3324_v24 = vsel %vm3292_vm13, %v4380_v23, 0.0  ;;  %vm3407_vm4 = vcmp.eq.s32.totalorder %v3406_v51, %v4927_v29 }
 0x630   :  { %v3325_v25 = vrot.slane %v3324_v24, 4  ;;  %v3749_v54 = vsel %vm3407_vm4, 1.0, %v4390_v13 }
 0x631   :  { %v3410_v58 = vsel %vm3345_vm5, %v3749_v54, 0.0 }
 0x632   :  { %v3326_v56 = vadd.f32 %v3325_v25, %v3324_v24 }
 0x634   :  { %v3327_v63 = vrot.slane %v3326_v56, 2 }
 0x636   :  { %v3328_v26 = vadd.f32 %v3327_v63, %v3326_v56 }
 0x638   :  { %v3329_v34 = vrot.slane %v3328_v26, 1 }
 0x63a   :  { %v3330_v27 = vadd.f32 %v3329_v34, %v3328_v26 }
 0x63c   :  { %4381 = vlog2.f32 %v3330_v27 }
 0x646   :  { %v4382_v30 = vpop.eup %4381 }
 0x647   :  { %v3332_v31 = vmul.f32 0.6931472, %v4382_v30 }
 0x649   :  { %v3333_v32 = vadd.f32 %v3332_v31, %v3320_v21 }
 0x64b   :  { %v3346_v53 = vsel %vm3345_vm5, %v3333_v32, 0.0 }
 0x6a1   :  { %v3305_v38 = vpop.xlane.xlu0 %3304 }
 0x6a2   :  { %v3306_v39 = vsub.f32 %v3282_v14, %v3305_v38  ;;  %vm3362_vm0 = vcmp.eq.f32.partialorder %v3282_v14, %v3305_v38 }
 0x6a3   :  { %v3363_v61 = vsel %vm3362_vm0, %v4927_v29, 2 }
 0x6a4   :  { %v3307_v41 = vmul.f32 1.442695, %v3306_v39  ;;  %v3364_v3 = vsel %vm3292_vm13, %v3363_v61, 2147483647 }
 0x6a5   :  { %v3366_v42 = vshra.s32 %v3364_v3, 16  ;;  %v3365_v60 = vand.u32 65535, %v3364_v3 }
 0x6a6   :  { %4383 = vpow2.f32 %v3307_v41 }
 0x6a7   :  { %v3368_v44 = vcvt.s32.f32 %v3366_v42  ;;  %v3367_v4 = vcvt.s32.f32 %v3365_v60 }
 0x6a9   :  { %3369 = vmin.xlane.f32.xlu1 %v3368_v44 }
 0x6b0   :  { %v4384_v47 = vpop.eup %4383 }
 0x6b1   :  { %v3309_v49 = vsel %vm3292_vm13, %v4384_v47, 0.0 }
 0x6b2   :  { %3310 = vadd.xlane.f32.xlu0 %v3309_v49 }
 0x6b6   :  { %3294 = vadd.xlane.f32.xlu0 %v3293_v52 }
 0x6ba   :  { %3347 = vadd.xlane.f32.xlu0 %v3346_v53 }
 0x6be   :  { %3411 = vadd.xlane.f32.xlu0 %v3410_v58 }
 0x736   :  { %v3370_v1 = vpop.xlane.xlu1 %3369 }
 0x737   :  { %vm3371_vm6 = vcmp.eq.f32.partialorder %v3368_v44, %v3370_v1  ;;  %v3376_v14 = vcvt.f32.s32 %v3370_v1 }
 0x738   :  { %v3372_v5 = vsel %vm3371_vm6, %v3367_v4, inf }
 0x739   :  { %3373 = vmin.xlane.f32.xlu1 %v3372_v5  ;;  %v3377_v15 = vshll.u32 %v3376_v14, 16 }
 0x73f   :  { %v3311_v6 = vpop.xlane.xlu0 %3310 }
 0x740   :  { %4385 = vlog2.f32 %v3311_v6 }
 0x743   :  { %v3295_v7 = vpop.xlane.xlu0 %3294 }
 0x744   :  { %v3296_v8 = vrot.slane %v3295_v7, 4 }
 0x746   :  { %v3297_v46 = vadd.f32 %v3296_v8, %v3295_v7 }
 0x747   :  { %v3348_v20 = vpop.xlane.xlu0 %3347 }
 0x748   :  { %v3298_v9 = vrot.slane %v3297_v46, 2  ;;  %v3349_v21 = vrot.slane %v3348_v20, 4 }
 0x74a   :  { %v4386_v10 = vpop.eup %4385  ;;  %v3299_v43 = vadd.f32 %v3298_v9, %v3297_v46  ;;  %v3350_v22 = vadd.f32 %v3349_v21, %v3348_v20 }
 0x74b   :  { %v3313_v62 = vmul.f32 0.6931472, %v4386_v10 }
 0x74c   :  { %v3300_v59 = vrot.slane %v3299_v43, 1  ;;  %v3351_v57 = vrot.slane %v3350_v22, 2 }
 0x74d   :  { %v3314_v55 = vadd.f32 %v3313_v62, %v3305_v38 }
 0x74e   :  { %v3301_v0 = vadd.f32 %v3300_v59, %v3299_v43  ;;  %v3352_v56 = vadd.f32 %v3351_v57, %v3350_v22 }
 0x74f   :  { %v3335_v12 = vsel %vm3334_vm7, %v3314_v55, 0.0 }
 0x750   :  { %3336 = vadd.xlane.f32.xlu1 %v3335_v12  ;;  %3912 = vpush %v3301_v0  ;;  %v3353_v34 = vrot.slane %v3352_v56, 1 }
 0x752   :  { %v3354_v31 = vadd.f32 %v3353_v34, %v3352_v56 }
 0x781   :  { %s3913_s7 = spop %3912 }
 0x782   :  { %s3357_s23 = smul.f32 2.0, %s3913_s7 }
 0x7c6   :  { %v3374_v11 = vpop.xlane.xlu1 %3373 }
 0x7c7   :  { %v3375_v2 = vcvt.f32.s32 %v3374_v11 }
 0x7c9   :  { %v3378_v16 = vadd.s32 %v3377_v15, %v3375_v2 }
 0x7cb   :  { %vm3379_vm8 = vcmp.eq.s32.totalorder %v3378_v16, %v4925_v28  ;;  %v3412_v28 = vpop.xlane.xlu0 %3411 }
 0x7cc   :  { %v3748_v18 = vsel %vm3379_vm8, 1.0, %v4390_v13  ;;  %v3413_v13 = vrot.slane %v3412_v28, 4 }
 0x7cd   :  { %v3382_v19 = vsel %vm3334_vm7, %v3748_v18, 0.0 }
 0x7ce   :  { %3383 = vadd.xlane.f32.xlu1 %v3382_v19  ;;  %v3414_v32 = vadd.f32 %v3413_v13, %v3412_v28 }
 0x7d0   :  { %v3415_v35 = vrot.slane %v3414_v32, 2 }
 0x7d2   :  { %v3416_v38 = vadd.f32 %v3415_v35, %v3414_v32 }
 0x7d4   :  { %v3417_v40 = vrot.slane %v3416_v38, 1 }
 0x7d6   :  { %v3418_v42 = vadd.f32 %v3417_v40, %v3416_v38 }
 0x7dd   :  { %v3337_v23 = vpop.xlane.xlu1 %3336 }
 0x7de   :  { %v3338_v24 = vrot.slane %v3337_v23, 4 }
 0x7e0   :  { %v3339_v25 = vadd.f32 %v3338_v24, %v3337_v23 }
 0x7e2   :  { %v3340_v63 = vrot.slane %v3339_v25, 2 }
 0x7e4   :  { %v3341_v26 = vadd.f32 %v3340_v63, %v3339_v25 }
 0x7e6   :  { %v3342_v27 = vrot.slane %v3341_v26, 1 }
 0x7e8   :  { %v3343_v30 = vadd.f32 %v3342_v27, %v3341_v26 }
 0x7ea   :  { %3914 = vpush %v3343_v30 }
 0x7eb   :  { %3916 = vpush %v3354_v31 }
 0x81b   :  { %s3915_s21 = spop %3914 }
 0x81c   :  { %s3917_s22 = spop %3916 }
 0x81d   :  { %s3356_s3 = sadd.f32 %s3917_s22, %s3915_s21 }
 0x81f   :  { %s3358_s4 = ssub.f32 %s3356_s3, %s3357_s23 }
 0x821   :  { %s3361_s1 = smul.f32 0.25, %s3358_s4 }
 0x823   :  { %v3430_v17 = vstv %s3361_s1 }
 0x85b   :  { %v3384_v36 = vpop.xlane.xlu1 %3383 }
 0x85c   :  { %v3385_v37 = vrot.slane %v3384_v36, 4 }
 0x85e   :  { %v3386_v33 = vadd.f32 %v3385_v37, %v3384_v36 }
 0x860   :  { %v3387_v39 = vrot.slane %v3386_v33, 2 }
 0x862   :  { %v3388_v61 = vadd.f32 %v3387_v39, %v3386_v33 }
 0x864   :  { %v3389_v41 = vrot.slane %v3388_v61, 1 }
 0x866   :  { %v3390_v3 = vadd.f32 %v3389_v41, %v3388_v61 }
 0x868   :  { %3918 = vpush %v3390_v3 }
 0x869   :  { %3920 = vpush %v3418_v42 }
 0x899   :  { %s3919_s24 = spop %3918 }
 0x89a   :  { %s3394_s25 = smul.f32 0.5, %s3919_s24  ;;  %s3921_s26 = spop %3920 }
 0x89b   :  { %s3422_s27 = smul.f32 0.5, %s3921_s26 }
 0x89c   :  { %v3426_v44 = vstv %s3394_s25 }
 0x89d   :  { %v3427_v45 = vsel %vm3425_vm9, %v3426_v44, 0.0  ;;  %v3428_v48 = vstv %s3422_s27 }
 0x89e   :  { %v3429_v47 = vsel %vm3424_vm10, %v3428_v48, %v3427_v45 }
 0x89f   :  { %v3431_v49 = vsel %vm3423_vm11, %v3430_v17, %v3429_v47 }
 0x8a0   :  { %3432 = vst [vmem:[%s5847_s8] sm:$0x1] %v3431_v49 }

</bundles_post_ra>
